<compile_context>
chip_gen: v7x
topology: tpu7x:2x2x1
jax: 0.10.0
libtpu: 0.0.40
codegen_flags: <defaults>
</compile_context>

<pallas_src>
import functools

import jax
import jax.numpy as jnp
from jax.experimental import pallas as pl
from jax.experimental.pallas import tpu as pltpu


# ---------------------------------------------------------------------------
# Hardware-aware knobs
# ---------------------------------------------------------------------------

def _vmem_limit_bytes():
    """Generation-aware scoped-VMEM limit (leave headroom for the compiler)."""
    try:
        cap = int(pltpu.get_tpu_info().vmem_capacity_bytes)
    except Exception:  # pragma: no cover - conservative fallback
        cap = 128 * 1024 * 1024
    if cap <= 64 * 1024 * 1024:            # v7x-class: 64 MiB physical
        return 40 * 1024 * 1024
    return min(100 * 1024 * 1024, cap - 28 * 1024 * 1024)   # v5e / v6e


def _pick_t_tile(T, Hp, Wp, C, vmem_limit):
    """Largest divisor of T (<=4) whose depthwise working set fits VMEM."""
    frame_f32 = Hp * Wp * C * 4
    tt = 1
    for cand in range(2, min(T, 4) + 1):
        if T % cand:
            continue
        # bf16 main (x2 buf) + bf16 halo (x2 buf) + f32 upcast + f32 acc
        # + bf16 out (x2 buf)  ~= (3*cand + 5) f32-frames.
        est = (3 * cand + 5) * frame_f32
        if est <= (vmem_limit * 7) // 10:
            tt = cand
    return tt


# ---------------------------------------------------------------------------
# Kernels
# ---------------------------------------------------------------------------

def _pw_kernel(x_ref, w_ref, b_ref, o_ref, *, apply_relu):
    """1x1x1 conv (MXU matmul, BN scale pre-folded into bf16 w) + bias(+ReLU)."""
    a = x_ref[...].astype(jnp.bfloat16)
    acc = jnp.dot(a, w_ref[...], preferred_element_type=jnp.float32)
    acc = acc + b_ref[...]
    if apply_relu:
        acc = jnp.maximum(acc, 0.0)
    o_ref[...] = acc.astype(o_ref.dtype)


def _dw_pool_kernel(hm_ref, hp_ref, hn_ref, w_ref, b_ref, y_ref, s_ref, *, tt):
    """Depthwise 3x3x3 conv (stride 1, spatial pad pre-applied, BN scale
    folded into taps) + bias, T-tiled with a one-frame temporal halo.
    Per-output-frame f32 accumulation; SE partial channel sums as 2nd output.
    """
    t = pl.program_id(1)
    n_t = pl.num_programs(1)
    Hp, Wp, C = hm_ref.shape[2], hm_ref.shape[3], hm_ref.shape[4]
    H, W = Hp - 2, Wp - 2

    # Upcast the whole block once (v5e VPU has no bf16 path).
    main = hm_ref[0].astype(jnp.float32)                  # (tt, Hp, Wp, C)
    pmask = (t > 0).astype(jnp.float32)                   # temporal zero-pad
    nmask = (t < n_t - 1).astype(jnp.float32)
    prev = hp_ref[0, 0].astype(jnp.float32) * pmask       # (Hp, Wp, C)
    nxt = hn_ref[0, 0].astype(jnp.float32) * nmask        # (Hp, Wp, C)

    w = w_ref[...]                                        # (27, C) f32
    bias = b_ref[0]                                       # (C,)
    csum = jnp.zeros((1, C), jnp.float32)

    for f in range(tt):                                   # per-frame accumulator
        acc = jnp.zeros((H, W, C), jnp.float32)
        tap = 0
        for dt in range(3):
            local = f + dt - 1
            if local < 0:
                src = prev
            elif local >= tt:
                src = nxt
            else:
                src = main[local]                         # (Hp, Wp, C)
            for dw in range(3):
                pass  # (keep tap order dt, dh, dw below)
            for dh in range(3):
                for dw in range(3):
                    acc = acc + src[dh:dh + H, dw:dw + W, :] * w[tap]
                    tap += 1
        acc = acc + bias
        y_ref[0, f] = acc.astype(y_ref.dtype)
        # SE pooling contribution from the f32 accumulator (outer then sublane).
        csum = csum + jnp.sum(jnp.sum(acc, axis=0), axis=0)
    s_ref[0, 0] = csum


def _gate_swish_pw_res_kernel(x_ref, g_ref, w_ref, b_ref, id_ref, o_ref,
                              *, use_swish):
    """Fused: SE gate * x -> Swish -> conv3 (1x1x1 bf16 MXU matmul, BN scale
    folded) + bias + residual add + ReLU, on one (tm, planes) row tile."""
    v = x_ref[0].astype(jnp.float32) * g_ref[0].astype(jnp.float32)
    if use_swish:
        v = v * pl.reciprocal(1.0 + jnp.exp(-v), approx=True)
    acc = jnp.dot(v.astype(jnp.bfloat16), w_ref[...],
                  preferred_element_type=jnp.float32)
    acc = acc + b_ref[...] + id_ref[0].astype(jnp.float32)
    o_ref[0] = jnp.maximum(acc, 0.0).astype(o_ref.dtype)


# ---------------------------------------------------------------------------
# Wrappers (grid / BlockSpec plumbing)
# ---------------------------------------------------------------------------

def pointwise_conv(x2d, w, bias, *, relu, out_dtype, tm, vmem_limit):
    """conv1-style pointwise matmul over flattened rows."""
    M, Cin = x2d.shape
    Cout = w.shape[1]
    tm = min(tm, M)
    grid = (pl.cdiv(M, tm),)
    return pl.pallas_call(
        functools.partial(_pw_kernel, apply_relu=relu),
        out_shape=jax.ShapeDtypeStruct((M, Cout), out_dtype),
        grid_spec=pltpu.PrefetchScalarGridSpec(
            num_scalar_prefetch=0, grid=grid,
            in_specs=[
                pl.BlockSpec((tm, Cin), lambda i: (i, 0)),
                pl.BlockSpec((Cin, Cout), lambda i: (0, 0)),
                pl.BlockSpec((1, Cout), lambda i: (0, 0)),
            ],
            out_specs=pl.BlockSpec((tm, Cout), lambda i: (i, 0)),
        ),
        compiler_params=pltpu.CompilerParams(
            dimension_semantics=("parallel",),
            vmem_limit_bytes=vmem_limit),
    )(x2d, w, bias)


def dwconv_bias_pool(h_pad, w_taps, bias, *, T, H, W, t_tile, vmem_limit):
    """Depthwise 3x3x3 + bias (T-tiled); also returns per-tile SE channel sums
    of shape (N, T // t_tile, 1, C) in f32."""
    N, _, Hp, Wp, C = h_pad.shape
    tt = t_tile
    n_t = T // tt
    grid = (N, n_t)

    main_map = lambda n, t: (n, t, 0, 0, 0)
    prev_map = lambda n, t: (n, jnp.maximum(t * tt - 1, 0), 0, 0, 0)
    next_map = lambda n, t: (n, jnp.minimum(t * tt + tt, T - 1), 0, 0, 0)

    return pl.pallas_call(
        functools.partial(_dw_pool_kernel, tt=tt),
        out_shape=(
            jax.ShapeDtypeStruct((N, T, H, W, C), jnp.bfloat16),
            jax.ShapeDtypeStruct((N, n_t, 1, C), jnp.float32),
        ),
        grid_spec=pltpu.PrefetchScalarGridSpec(
            num_scalar_prefetch=0, grid=grid,
            in_specs=[
                pl.BlockSpec((1, tt, Hp, Wp, C), main_map),
                pl.BlockSpec((1, 1, Hp, Wp, C), prev_map),   # temporal halo
                pl.BlockSpec((1, 1, Hp, Wp, C), next_map),   # temporal halo
                pl.BlockSpec((27, C), lambda n, t: (0, 0)),
                pl.BlockSpec((1, C), lambda n, t: (0, 0)),
            ],
            out_specs=[
                pl.BlockSpec((1, tt, H, W, C), main_map),
                pl.BlockSpec((1, 1, 1, C), lambda n, t: (n, t, 0, 0)),
            ],
        ),
        compiler_params=pltpu.CompilerParams(
            dimension_semantics=("parallel", "parallel"),
            vmem_limit_bytes=vmem_limit),
    )(h_pad, h_pad, h_pad, w_taps, bias)


def gate_swish_conv_res(x3, gate3, w, bias, identity3, *, use_swish, out_dtype,
                        tm, vmem_limit):
    """Fused SE-gate + Swish + conv3 + bias + residual + ReLU."""
    N, THW, Cin = x3.shape
    Cout = w.shape[1]
    tm = min(tm, THW)
    grid = (N, pl.cdiv(THW, tm))
    # NOTE: input_output_aliases={4: 0} (identity <-> out) is intentionally
    # omitted: identity aliases the caller-visible input x and donating it
    # would invalidate x for the caller.
    return pl.pallas_call(
        functools.partial(_gate_swish_pw_res_kernel, use_swish=use_swish),
        out_shape=jax.ShapeDtypeStruct((N, THW, Cout), out_dtype),
        grid_spec=pltpu.PrefetchScalarGridSpec(
            num_scalar_prefetch=0, grid=grid,
            in_specs=[
                pl.BlockSpec((1, tm, Cin), lambda n, i: (n, i, 0)),
                pl.BlockSpec((1, 1, Cin), lambda n, i: (n, 0, 0)),
                pl.BlockSpec((Cin, Cout), lambda n, i: (0, 0)),
                pl.BlockSpec((1, Cout), lambda n, i: (0, 0)),
                pl.BlockSpec((1, tm, Cout), lambda n, i: (n, i, 0)),
            ],
            out_specs=pl.BlockSpec((1, tm, Cout), lambda n, i: (n, i, 0)),
        ),
        compiler_params=pltpu.CompilerParams(
            dimension_semantics=("parallel", "parallel"),
            vmem_limit_bytes=vmem_limit),
    )(x3, gate3, w, bias, identity3)


# ---------------------------------------------------------------------------
# BlockX3D forward (Pallas)
# ---------------------------------------------------------------------------

def block_x3d_forward(x, p, *, spatial_stride=1, se_ratio=None, use_swish=True):
    """x: (N, T, H, W, Cin) float32. Returns (N, T, H, W, Cout) float32."""
    N, T, H, W, Cin = x.shape
    planes = p["w1"].shape[1]
    outplanes = p["w3"].shape[1]
    # downsample is None in this module config: the residual add requires this.
    assert spatial_stride == 1 and Cin == outplanes, (
        "With downsample=None the residual add needs spatial_stride==1 and "
        "inplanes==outplanes.")

    vmem_limit = _vmem_limit_bytes()

    # Fold eval-mode BN scale into conv weights. Matmul weights go bf16 (MXU
    # bf16 operands); depthwise taps stay f32 (VALU math is f32).
    w1 = (p["w1"] * p["s1"]).astype(jnp.bfloat16)          # (Cin, planes)
    wdw = (p["wdw"] * p["s2"]).astype(jnp.float32)         # (27, planes)
    w3 = (p["w3"] * p["s3"]).astype(jnp.bfloat16)          # (planes, Cout)

    # conv1 (1x1x1) + BN + ReLU; output stored bf16 (halves HBM traffic).
    h = pointwise_conv(x.reshape(N * T * H * W, Cin), w1, p["b1"],
                       relu=True, out_dtype=jnp.bfloat16, tm=2048,
                       vmem_limit=vmem_limit)
    h = h.reshape(N, T, H, W, planes)

    # conv2: 3x3x3 depthwise (stride 1, pad 1) + BN bias, fused SE pooling.
    # Spatial (H, W) halo via XLA pad on the bf16 tensor; temporal halo is
    # assembled inside the kernel.
    h_pad = jnp.pad(h, ((0, 0), (0, 0), (1, 1), (1, 1), (0, 0)))
    tt = _pick_t_tile(T, H + 2, W + 2, planes, vmem_limit)
    y, tile_sums = dwconv_bias_pool(h_pad, wdw, p["b2"], T=T, H=H, W=W,
                                    t_tile=tt, vmem_limit=vmem_limit)

    # SE bottleneck FCs in plain JAX (tiny N x planes matmuls).
    if se_ratio is not None:
        pooled = jnp.sum(tile_sums, axis=(1, 2)) / float(T * H * W)  # (N, planes)
        hh = jnp.maximum(pooled @ p["wse1"] + p["bse1"], 0.0)
        gate = jax.nn.sigmoid(hh @ p["wse2"] + p["bse2"])            # (N, planes)
        gate3 = gate.reshape(N, 1, planes).astype(jnp.float32)
    else:
        gate3 = jnp.ones((N, 1, planes), jnp.float32)

    # Fused: SE gate * x -> Swish -> conv3 + BN bias -> + identity -> ReLU.
    out = gate_swish_conv_res(
        y.reshape(N, T * H * W, planes), gate3, w3, p["b3"],
        x.reshape(N, T * H * W, outplanes), use_swish=use_swish,
        out_dtype=x.dtype, tm=2048, vmem_limit=vmem_limit)
    return out.reshape(N, T, H, W, outplanes)


# ---------------------------------------------------------------------------
# Deterministic parameter setup + pure-JAX f32 reference
# ---------------------------------------------------------------------------

def _round_width(width, multiplier, min_width=8, divisor=8):
    width *= multiplier
    min_width = min_width or divisor
    width_out = max(min_width, int(width + divisor / 2) // divisor * divisor)
    if width_out < 0.9 * width:
        width_out += divisor
    return int(width_out)


def make_params(key, inplanes, planes, outplanes, se_ratio):
    ks = jax.random.split(key, 24)
    it = iter(range(24))

    def nrm(shape, scale=0.1):
        return (scale * jax.random.normal(ks[next(it)], shape)).astype(jnp.float32)

    def bn_fold(C):
        gamma = 1.0 + 0.1 * jax.random.normal(ks[next(it)], (C,))
        beta = 0.1 * jax.random.normal(ks[next(it)], (C,))
        mean = 0.1 * jax.random.normal(ks[next(it)], (C,))
        var = jnp.abs(jax.random.normal(ks[next(it)], (C,))) + 0.5
        scale = gamma / jnp.sqrt(var + 1e-5)
        bias = beta - mean * scale
        return (scale.reshape(1, C).astype(jnp.float32),
                bias.reshape(1, C).astype(jnp.float32))

    p = {}
    p["w1"] = nrm((inplanes, planes))            # conv1: (Cin, planes)
    p["s1"], p["b1"] = bn_fold(planes)
    p["wdw"] = nrm((27, planes))                 # depthwise taps (dt,dh,dw) x C
    p["s2"], p["b2"] = bn_fold(planes)
    p["w3"] = nrm((planes, outplanes))           # conv3: (planes, Cout)
    p["s3"], p["b3"] = bn_fold(outplanes)
    if se_ratio is not None:
        bneck = _round_width(planes, se_ratio)
        p["wse1"] = nrm((planes, bneck))
        p["bse1"] = nrm((1, bneck))
        p["wse2"] = nrm((bneck, planes))
        p["bse2"] = nrm((1, planes))
    return p


def reference_forward(x, p, *, se_ratio, use_swish):
    N, T, H, W, Cin = x.shape
    planes = p["w1"].shape[1]
    hi = jax.lax.Precision.HIGHEST

    def pw(v, w, s, b, relu):
        y = jnp.einsum("nthwc,cd->nthwd", v, w, precision=hi) * s[0] + b[0]
        return jnp.maximum(y, 0.0) if relu else y

    h = pw(x, p["w1"], p["s1"], p["b1"], True)
    hp = jnp.pad(h, ((0, 0), (1, 1), (1, 1), (1, 1), (0, 0)))
    acc = jnp.zeros((N, T, H, W, planes), jnp.float32)
    tap = 0
    for dt in range(3):
        for dh in range(3):
            for dw in range(3):
                acc = acc + hp[:, dt:dt + T, dh:dh + H, dw:dw + W, :] * p["wdw"][tap]
                tap += 1
    h = acc * p["s2"][0] + p["b2"][0]
    if se_ratio is not None:
        pooled = h.mean(axis=(1, 2, 3))
        g = jnp.maximum(pooled @ p["wse1"] + p["bse1"][0], 0.0)
        g = jax.nn.sigmoid(g @ p["wse2"] + p["bse2"][0])
        h = h * g[:, None, None, None, :]
    if use_swish:
        h = h * jax.nn.sigmoid(h)
    h = pw(h, p["w3"], p["s3"], p["b3"], False)
    return jnp.maximum(h + x, 0.0)


# ---------------------------------------------------------------------------

if __name__ == "__main__":
    # Small shapes consistent with the module: residual add (downsample=None)
    # requires inplanes == outplanes and spatial_stride == 1.  T=8 exercises
    # the multi-tile depthwise path (T tile = 4 -> 2 tiles with halo exchange).
    N, T, H, W = 2, 8, 8, 8
    inplanes, planes, outplanes = 16, 32, 16
    spatial_stride = 1
    se_ratio = 1.0 / 16.0
    use_swish = True

    key = jax.random.PRNGKey(0)
    kx, kp = jax.random.split(key)
    # PyTorch input would be NCDHW (N, Cin, T, H, W); kernel layout is NDHWC.
    x_ncdhw = jax.random.normal(kx, (N, inplanes, T, H, W), jnp.float32)
    x = jnp.transpose(x_ncdhw, (0, 2, 3, 4, 1))  # -> (N, T, H, W, Cin)

    params = make_params(kp, inplanes, planes, outplanes, se_ratio)

    out = block_x3d_forward(x, params, spatial_stride=spatial_stride,
                            se_ratio=se_ratio, use_swish=use_swish)
    out = jax.block_until_ready(out)

    ref = reference_forward(x, params, se_ratio=se_ratio, use_swish=use_swish)
    assert out.shape == (N, T, H, W, outplanes)
    err = float(jnp.max(jnp.abs(out - ref)))
    # bf16 activation/weight storage in the Pallas path -> loose tolerance.
    assert jnp.allclose(out, ref, rtol=2e-2, atol=2e-2), err
    print("KERNEL_OK")
</pallas_src>

<mosaic_0001>
module attributes {stable_mosaic.version = 11 : i64} {
  func.func @_pw_kernel(%arg0: i32, %arg1: memref<1024x16xf32, #tpu.memory_space<vmem>>, %arg2: memref<16x32xbf16, #tpu.memory_space<vmem>>, %arg3: memref<1x32xf32, #tpu.memory_space<vmem>>, %arg4: memref<1024x32xbf16, #tpu.memory_space<vmem>>) attributes {dimension_semantics = [#tpu.dimension_semantics<parallel>], iteration_bounds = array<i64: 1>, scalar_prefetch = 0 : i64, scratch_operands = 0 : i64, tpu.core_type = #tpu.core_type<tc>, window_params = [{transform_indices = @transform_0, window_bounds = array<i64: 1024, 16>}, {pipeline_mode = #tpu.pipeline_mode<synchronous>, transform_indices = @transform_1, window_bounds = array<i64: 16, 32>}, {pipeline_mode = #tpu.pipeline_mode<synchronous>, transform_indices = @transform_2, window_bounds = array<i64: 1, 32>}, {transform_indices = @transform_3, window_bounds = array<i64: 1024, 32>}]} {
    %c0 = arith.constant 0 : index
    %c0_0 = arith.constant 0 : index
    %0 = vector.load %arg1[%c0, %c0_0] : memref<1024x16xf32, #tpu.memory_space<vmem>>, vector<1024x16xf32>
    %1 = arith.truncf %0 : vector<1024x16xf32> to vector<1024x16xbf16>
    %c0_1 = arith.constant 0 : index
    %c0_2 = arith.constant 0 : index
    %2 = vector.load %arg2[%c0_1, %c0_2] : memref<16x32xbf16, #tpu.memory_space<vmem>>, vector<16x32xbf16>
    %cst = arith.constant dense<0.000000e+00> : vector<1024x32xf32>
    %3 = tpu.matmul %1, %2, %cst {dimension_numbers = #tpu.dot_dimension_numbers<[1], [0], [0], [1], [0, 0, 1, 1], [], []>} : vector<1024x16xbf16>, vector<16x32xbf16>, vector<1024x32xf32> -> vector<1024x32xf32>
    %c0_3 = arith.constant 0 : index
    %c0_4 = arith.constant 0 : index
    %4 = vector.load %arg3[%c0_3, %c0_4] : memref<1x32xf32, #tpu.memory_space<vmem>>, vector<1x32xf32>
    %5 = vector.broadcast %4 : vector<1x32xf32> to vector<1024x32xf32>
    %6 = arith.addf %3, %5 : vector<1024x32xf32>
    %cst_5 = arith.constant 0.000000e+00 : f32
    %7 = vector.broadcast %cst_5 : f32 to vector<1024x32xf32>
    %8 = arith.maximumf %6, %7 : vector<1024x32xf32>
    %9 = arith.truncf %8 : vector<1024x32xf32> to vector<1024x32xbf16>
    %c0_6 = arith.constant 0 : index
    %c0_7 = arith.constant 0 : index
    %10 = vector.load %arg4[%c0_6, %c0_7] : memref<1024x32xbf16, #tpu.memory_space<vmem>>, vector<1024x32xbf16>
    tpu.vector_store %arg4[%c0_6, %c0_7], %9 {strides = array<i32>} : memref<1024x32xbf16, #tpu.memory_space<vmem>>, vector<1024x32xbf16>,
    return
  }
  func.func @transform_0(%arg0: i32) -> (i32, i32) {
    %c0_i32 = arith.constant 0 : i32
    %c0_i32_0 = arith.constant 0 : i32
    return %arg0, %c0_i32 : i32, i32
  }
  func.func @transform_1(%arg0: i32) -> (i32, i32) {
    %c0_i32 = arith.constant 0 : i32
    %c0_i32_0 = arith.constant 0 : i32
    %c0_i32_1 = arith.constant 0 : i32
    return %c0_i32, %c0_i32_0 : i32, i32
  }
  func.func @transform_2(%arg0: i32) -> (i32, i32) {
    %c0_i32 = arith.constant 0 : i32
    %c0_i32_0 = arith.constant 0 : i32
    %c0_i32_1 = arith.constant 0 : i32
    return %c0_i32, %c0_i32_0 : i32, i32
  }
  func.func @transform_3(%arg0: i32) -> (i32, i32) {
    %c0_i32 = arith.constant 0 : i32
    %c0_i32_0 = arith.constant 0 : i32
    return %arg0, %c0_i32 : i32, i32
  }
}

</mosaic_0001>

<bundles_post_ra>
// kernel: tpu_custom_call.1
= control target key start
LH: loop header
LB: loop body
LE: loop exit
PB: predicated region body
PF: predicated region fallthrough
CT: control target
= control target key end

     0   :  { %8 = vsyncpa [#allocation3], 0  ;;  %s2816_s0 = inlined_call_operand.hbm [shape: f32[1024,16], index: 0, kind: input, shape index: {}]   ;;  %s2817_s1 = inlined_call_operand.hbm [shape: bf16[16,32], index: 1, kind: input, shape index: {}]   ;;  %s2818_s2 = inlined_call_operand.hbm [shape: f32[1,32], index: 2, kind: input, shape index: {}]   ;;  %s2819_s3 = inlined_call_operand.hbm [shape: bf16[1024,32], index: 3, kind: output, shape index: {}]  }
   0x1   :  { %9 = vsyncpa [#allocation6], 0 }
   0x2   :  { %10 = vsyncpa [#allocation4], 0  ;;  %s2410_s12 = smov [#allocation5]   ;;  %s2316_s16 = scalar_lea.hbm %s2817_s1, 128 }
   0x3   :  { %s28_s13 = sshll.u32 %s2410_s12, 4  ;;  %p2317_p0 = scmp.ne.s32.totalorder %s2817_s1, %s2316_s16  ;;  %s29_s13 = int_to_ptr.vmem [resolvable:$true] %s28_s13 }
   0x4   :  { %p2320_p1 = scmp.lt.u32.totalorder %s2316_s16, %s2817_s1 }
   0x6   :  { %p2322_p2 = pnand %p2320_p1, %p2317_p0 }
   0x8   :  { %2325 = shalt.err (!%p2322_p2)
}
   0x9   :  { %s2326_s21 = scalar_lea.vmem %s29_s13, 128  ;;  %p2331_p4 = scmp.lt.s32.totalorder %s29_s13, %s29_s13 }
   0xa   :  { %p2327_p3 = scmp.ne.s32.totalorder %s29_s13, %s2326_s21  ;;  %p2332_p5 = scmp.lt.s32.totalorder %s2326_s21, %s2326_s21 }
   0xc   :  { %p2333_p6 = por %p2332_p5, %p2331_p4 }
   0xe   :  { %p2334_p7 = pnand %p2333_p6, %p2327_p3 }
  0x10   :  { %2337 = shalt.err (!%p2334_p7)
}
  0x11   :  { %s2411_s22 = smov 64   ;;  %s2412_s23 = smov 4  }
  0x12   :  { %34 = dma.hbm_to_vmem [thread:$0]  %s2817_s1, 128, %s29_s13, [#allocation6], %s2411_s22, %s2411_s22, %s2412_s23  }
  0x13   :  { %s2413_s26 = smov [#allocation2]   ;;  %s2338_s30 = scalar_lea.hbm %s2816_s0, 16384 }
  0x14   :  { %s16_s27 = sshll.u32 %s2413_s26, 4  ;;  %p2339_p8 = scmp.ne.s32.totalorder %s2816_s0, %s2338_s30  ;;  %s17_s27 = int_to_ptr.vmem [resolvable:$true] %s16_s27 }
  0x15   :  { %p2342_p9 = scmp.lt.u32.totalorder %s2338_s30, %s2816_s0 }
  0x17   :  { %p2344_p10 = pnand %p2342_p9, %p2339_p8 }
  0x19   :  { %2347 = shalt.err (!%p2344_p10)
}
  0x1a   :  { %s2348_s8 = scalar_lea.vmem %s17_s27, 16384  ;;  %p2353_p12 = scmp.lt.s32.totalorder %s17_s27, %s17_s27 }
  0x1b   :  { %p2349_p11 = scmp.ne.s32.totalorder %s17_s27, %s2348_s8  ;;  %p2354_p13 = scmp.lt.s32.totalorder %s2348_s8, %s2348_s8 }
  0x1d   :  { %p2355_p0 = por %p2354_p13, %p2353_p12 }
  0x1f   :  { %p2356_p1 = pnand %p2355_p0, %p2349_p11 }
  0x21   :  { %2359 = shalt.err (!%p2356_p1)
}
  0x22   :  { %s2414_s1 = smov 128   ;;  %s2415_s9 = smov 8  }
  0x23   :  { %22 = dma.hbm_to_vmem [thread:$0]  %s2816_s0, 16384, %s17_s27, [#allocation3], %s2414_s1, %s2414_s1, %s2415_s9  }
  0x24   :  { %s2416_s12 = smov [#allocation7]   ;;  %s2360_s16 = scalar_lea.hbm %s2818_s2, 16 }
  0x25   :  { %s41_s13 = sshll.u32 %s2416_s12, 4  ;;  %p2361_p2 = scmp.ne.s32.totalorder %s2818_s2, %s2360_s16  ;;  %s42_s13 = int_to_ptr.vmem [resolvable:$true] %s41_s13 }
  0x26   :  { %p2364_p3 = scmp.lt.u32.totalorder %s2360_s16, %s2818_s2 }
  0x28   :  { %p2366_p4 = pnand %p2364_p3, %p2361_p2 }
  0x2a   :  { %2369 = shalt.err (!%p2366_p4)
}
  0x2b   :  { %s2370_s21 = scalar_lea.vmem %s42_s13, 16  ;;  %s2374_s0 = scalar_lea.vmem %s42_s13, 32 }
  0x2c   :  { %p2371_p5 = scmp.ne.s32.totalorder %s42_s13, %s2370_s21  ;;  %p2375_p6 = scmp.lt.s32.totalorder %s42_s13, %s42_s13 }
  0x2d   :  { %p2376_p7 = scmp.lt.s32.totalorder %s2374_s0, %s2370_s21 }
  0x2f   :  { %p2377_p8 = por %p2376_p7, %p2375_p6 }
  0x31   :  { %p2378_p9 = pnand %p2377_p8, %p2371_p5 }
  0x33   :  { %2381 = shalt.err (!%p2378_p9)
}
  0x34   :  { %44 = dma.hbm_to_vmem [thread:$0]  %s2818_s2, 16, %s42_s13, [#allocation6]  }
  0x35   :  { %2404 = dma.done.wait [#allocation3], 16384  }
  0x36   :  { %2405 = vsyncadd [#allocation3], 4294950912 }
  0x37   :  { %2406 = dma.done.wait [#allocation6], 144  }
  0x38   :  { %2407 = vsyncadd [#allocation6], 4294967152  ;;  %v2314_v0 = vld [vmem:[#allocation5] sm:$0xff]   ;;  %v56_v2 = vld [vmem:[#allocation2 + $0x8] sm:$0xff]  ;;  %vm262_vm0 = vcmask 130048   ;;  %vm1640_vm1 = vcmask 257024  }
  0x39   :  { %v55_v1 = vld [vmem:[#allocation2] sm:$0xff]  ;;  %2174 = vmatprep.subr.bf16.mxu0 %v2314_v0  ;;  %2304 = vmatprep.subr.bf16.mxu1 %v2314_v0  ;;  %v120_v5 = vld [vmem:[#allocation2 + $0x208] sm:$0xff]  ;;  %v57_v6 = vld [vmem:[#allocation2 + $0x10] sm:$0xff]  ;;  %s2417_s2 = smov [#allocation8]  }
  0x3a   :  { %v119_v3 = vld [vmem:[#allocation2 + $0x200] sm:$0xff]  ;;  %v183_v4 = vpack.c.bf16 %v56_v2, %v55_v1  ;;  %v58_v7 = vld [vmem:[#allocation2 + $0x18] sm:$0xff]  ;;  %2175 = vmatpush3.bf16.msra.mxu0 %v2314_v0  ;;  %2305 = vmatpush3.bf16.msra.mxu1 %v2314_v0  ;;  %v121_v10 = vld [vmem:[#allocation2 + $0x210] sm:$0xff]  ;;  %s1774_s26 = sshll.u32 %s2417_s2, 4  ;;  %s1775_s26 = int_to_ptr.vmem [resolvable:$true] %s1774_s26 }
  0x3b   :  { %v215_v8 = vpack.c.bf16 %v120_v5, %v119_v3  ;;  %v184_v9 = vpack.c.bf16 %v58_v7, %v57_v6  ;;  %v122_v11 = vld [vmem:[#allocation2 + $0x218] sm:$0xff]  ;;  %v59_v12 = vld [vmem:[#allocation2 + $0x20] sm:$0xff]  ;;  %v60_v14 = vld [vmem:[#allocation2 + $0x28] sm:$0xff]  ;;  %s2382_s27 = scalar_lea.vmem %s1775_s26, 8192  ;;  %p2387_p11 = scmp.lt.s32.totalorder %s1775_s26, %s1775_s26 }
  0x3c   :  { %2176 = vmatprep.mubr.msk.bf16.mxu0 %vm262_vm0, %v183_v4  ;;  %v216_v13 = vpack.c.bf16 %v122_v11, %v121_v10  ;;  %v123_v15 = vld [vmem:[#allocation2 + $0x220] sm:$0xff]  ;;  %v124_v16 = vld [vmem:[#allocation2 + $0x228] sm:$0xff]  ;;  %v185_v17 = vpack.c.bf16 %v60_v14, %v59_v12  ;;  %v61_v19 = vld [vmem:[#allocation2 + $0x30] sm:$0xff]  ;;  %p2383_p10 = scmp.ne.s32.totalorder %s1775_s26, %s2382_s27  ;;  %p2388_p12 = scmp.lt.s32.totalorder %s2382_s27, %s2382_s27 }
  0x3d   :  { %2240 = vmatprep.mubr.msk.bf16.mxu1 %vm262_vm0, %v215_v8  ;;  %v217_v18 = vpack.c.bf16 %v124_v16, %v123_v15  ;;  %2177 = vmatmul.mubr.msk.bf16.vlgmr.msra.gmra.mrb[0].mxu0 %vm262_vm0, %v184_v9  ;;  %v62_v20 = vld [vmem:[#allocation2 + $0x38] sm:$0xff]  ;;  %v125_v21 = vld [vmem:[#allocation2 + $0x230] sm:$0xff]  ;;  %v63_v23 = vld [vmem:[#allocation2 + $0x40] sm:$0xff] }
  0x3e   :  { %2241 = vmatmul.mubr.msk.bf16.vlgmr.msra.gmra.mrb[0].mxu1 %vm262_vm0, %v216_v13  ;;  %2180 = vmatprep.mubr.msk.bf16.mxu0 %vm262_vm0, %v185_v17  ;;  %v126_v22 = vld [vmem:[#allocation2 + $0x238] sm:$0xff]  ;;  %v64_v24 = vld [vmem:[#allocation2 + $0x48] sm:$0xff]  ;;  %v127_v25 = vld [vmem:[#allocation2 + $0x240] sm:$0xff]  ;;  %v186_v27 = vpack.c.bf16 %v62_v20, %v61_v19  ;;  %p2389_p13 = por %p2388_p12, %p2387_p11 }
  0x3f   :  { %2244 = vmatprep.mubr.msk.bf16.mxu1 %vm262_vm0, %v217_v18  ;;  %v128_v26 = vld [vmem:[#allocation2 + $0x248] sm:$0xff]  ;;  %v218_v28 = vpack.c.bf16 %v126_v22, %v125_v21  ;;  %v187_v29 = vpack.c.bf16 %v64_v24, %v63_v23  ;;  %v65_v31 = vld [vmem:[#allocation2 + $0x50] sm:$0xff]  ;;  %v66_v32 = vld [vmem:[#allocation2 + $0x58] sm:$0xff] }
  0x40   :  { %v219_v30 = vpack.c.bf16 %v128_v26, %v127_v25  ;;  %v129_v33 = vld [vmem:[#allocation2 + $0x250] sm:$0xff]  ;;  %v130_v34 = vld [vmem:[#allocation2 + $0x258] sm:$0xff]  ;;  %v67_v35 = vld [vmem:[#allocation2 + $0x60] sm:$0xff]  ;;  %v188_v39 = vpack.c.bf16 %v66_v32, %v65_v31  ;;  %p2390_p0 = pnand %p2389_p13, %p2383_p10 }
  0x41   :  { %v68_v36 = vld [vmem:[#allocation2 + $0x68] sm:$0xff]  ;;  %v131_v37 = vld [vmem:[#allocation2 + $0x260] sm:$0xff]  ;;  %v220_v40 = vpack.c.bf16 %v130_v34, %v129_v33  ;;  %v69_v43 = vld [vmem:[#allocation2 + $0x70] sm:$0xff] }
  0x42   :  { %v132_v38 = vld [vmem:[#allocation2 + $0x268] sm:$0xff]  ;;  %v189_v41 = vpack.c.bf16 %v68_v36, %v67_v35  ;;  %v70_v44 = vld [vmem:[#allocation2 + $0x78] sm:$0xff]  ;;  %v133_v45 = vld [vmem:[#allocation2 + $0x270] sm:$0xff] }
  0x43   :  { %v221_v42 = vpack.c.bf16 %v132_v38, %v131_v37  ;;  %v134_v46 = vld [vmem:[#allocation2 + $0x278] sm:$0xff]  ;;  %v71_v47 = vld [vmem:[#allocation2 + $0x80] sm:$0xff]  ;;  %v72_v48 = vld [vmem:[#allocation2 + $0x88] sm:$0xff]  ;;  %v190_v51 = vpack.c.bf16 %v70_v44, %v69_v43 }
  0x44   :  { %v135_v49 = vld [vmem:[#allocation2 + $0x280] sm:$0xff]  ;;  %v136_v50 = vld [vmem:[#allocation2 + $0x288] sm:$0xff]  ;;  %v222_v52 = vpack.c.bf16 %v134_v46, %v133_v45  ;;  %v191_v53 = vpack.c.bf16 %v72_v48, %v71_v47  ;;  %v73_v55 = vld [vmem:[#allocation2 + $0x90] sm:$0xff] }
  0x45   :  { %2181 = vmatmul.mubr.msk.bf16.gmra.mrb[4].mxu0 %vm262_vm0, %v186_v27  ;;  %v223_v54 = vpack.c.bf16 %v136_v50, %v135_v49  ;;  %v74_v56 = vld [vmem:[#allocation2 + $0x98] sm:$0xff]  ;;  %v137_v57 = vld [vmem:[#allocation2 + $0x290] sm:$0xff]  ;;  %v75_v59 = vld [vmem:[#allocation2 + $0xa0] sm:$0xff] }
  0x46   :  { %2245 = vmatmul.mubr.msk.bf16.gmra.mrb[4].mxu1 %vm262_vm0, %v218_v28  ;;  %2184 = vmatprep.mubr.msk.bf16.mxu0 %vm262_vm0, %v187_v29  ;;  %v138_v58 = vld [vmem:[#allocation2 + $0x298] sm:$0xff]  ;;  %v76_v60 = vld [vmem:[#allocation2 + $0xa8] sm:$0xff]  ;;  %v139_v61 = vld [vmem:[#allocation2 + $0x2a0] sm:$0xff]  ;;  %v192_v63 = vpack.c.bf16 %v74_v56, %v73_v55 }
  0x47   :  { %2248 = vmatprep.mubr.msk.bf16.mxu1 %vm262_vm0, %v219_v30  ;;  %v140_v62 = vld [vmem:[#allocation2 + $0x2a8] sm:$0xff]  ;;  %v224_v0 = vpack.c.bf16 %v138_v58, %v137_v57  ;;  %v193_v1 = vpack.c.bf16 %v76_v60, %v75_v59  ;;  %v77_v3 = vld [vmem:[#allocation2 + $0xb0] sm:$0xff]  ;;  %v78_v4 = vld [vmem:[#allocation2 + $0xb8] sm:$0xff] }
  0x48   :  { %v225_v2 = vpack.c.bf16 %v140_v62, %v139_v61  ;;  %v141_v5 = vld [vmem:[#allocation2 + $0x2b0] sm:$0xff]  ;;  %v142_v6 = vld [vmem:[#allocation2 + $0x2b8] sm:$0xff]  ;;  %v79_v7 = vld [vmem:[#allocation2 + $0xc0] sm:$0xff]  ;;  %v194_v11 = vpack.c.bf16 %v78_v4, %v77_v3 }
  0x49   :  { %v80_v8 = vld [vmem:[#allocation2 + $0xc8] sm:$0xff]  ;;  %v143_v9 = vld [vmem:[#allocation2 + $0x2c0] sm:$0xff]  ;;  %v226_v12 = vpack.c.bf16 %v142_v6, %v141_v5  ;;  %v81_v15 = vld [vmem:[#allocation2 + $0xd0] sm:$0xff] }
  0x4a   :  { %v144_v10 = vld [vmem:[#allocation2 + $0x2c8] sm:$0xff]  ;;  %v195_v13 = vpack.c.bf16 %v80_v8, %v79_v7  ;;  %v82_v16 = vld [vmem:[#allocation2 + $0xd8] sm:$0xff]  ;;  %v145_v17 = vld [vmem:[#allocation2 + $0x2d0] sm:$0xff] }
  0x4b   :  { %v227_v14 = vpack.c.bf16 %v144_v10, %v143_v9  ;;  %v146_v18 = vld [vmem:[#allocation2 + $0x2d8] sm:$0xff]  ;;  %v83_v19 = vld [vmem:[#allocation2 + $0xe0] sm:$0xff]  ;;  %v84_v20 = vld [vmem:[#allocation2 + $0xe8] sm:$0xff]  ;;  %v196_v23 = vpack.c.bf16 %v82_v16, %v81_v15 }
  0x4c   :  { %v147_v21 = vld [vmem:[#allocation2 + $0x2e0] sm:$0xff]  ;;  %v148_v22 = vld [vmem:[#allocation2 + $0x2e8] sm:$0xff]  ;;  %v228_v24 = vpack.c.bf16 %v146_v18, %v145_v17  ;;  %v197_v25 = vpack.c.bf16 %v84_v20, %v83_v19  ;;  %v85_v27 = vld [vmem:[#allocation2 + $0xf0] sm:$0xff] }
  0x4d   :  { %2185 = vmatmul.mubr.msk.bf16.gmra.mrb[8].mxu0 %vm262_vm0, %v188_v39  ;;  %v229_v26 = vpack.c.bf16 %v148_v22, %v147_v21  ;;  %v86_v28 = vld [vmem:[#allocation2 + $0xf8] sm:$0xff]  ;;  %v149_v29 = vld [vmem:[#allocation2 + $0x2f0] sm:$0xff]  ;;  %v87_v31 = vld [vmem:[#allocation2 + $0x100] sm:$0xff] }
  0x4e   :  { %2249 = vmatmul.mubr.msk.bf16.gmra.mrb[8].mxu1 %vm262_vm0, %v220_v40  ;;  %2188 = vmatprep.mubr.msk.bf16.mxu0 %vm262_vm0, %v189_v41  ;;  %v150_v30 = vld [vmem:[#allocation2 + $0x2f8] sm:$0xff]  ;;  %v88_v32 = vld [vmem:[#allocation2 + $0x108] sm:$0xff]  ;;  %v151_v33 = vld [vmem:[#allocation2 + $0x300] sm:$0xff]  ;;  %v198_v35 = vpack.c.bf16 %v86_v28, %v85_v27 }
  0x4f   :  { %2252 = vmatprep.mubr.msk.bf16.mxu1 %vm262_vm0, %v221_v42  ;;  %v152_v34 = vld [vmem:[#allocation2 + $0x308] sm:$0xff]  ;;  %v230_v36 = vpack.c.bf16 %v150_v30, %v149_v29  ;;  %v199_v37 = vpack.c.bf16 %v88_v32, %v87_v31  ;;  %v89_v39 = vld [vmem:[#allocation2 + $0x110] sm:$0xff]  ;;  %v90_v40 = vld [vmem:[#allocation2 + $0x118] sm:$0xff] }
  0x50   :  { %v231_v38 = vpack.c.bf16 %v152_v34, %v151_v33  ;;  %v153_v41 = vld [vmem:[#allocation2 + $0x310] sm:$0xff]  ;;  %v154_v42 = vld [vmem:[#allocation2 + $0x318] sm:$0xff]  ;;  %v91_v43 = vld [vmem:[#allocation2 + $0x120] sm:$0xff]  ;;  %v200_v47 = vpack.c.bf16 %v90_v40, %v89_v39 }
  0x51   :  { %v92_v44 = vld [vmem:[#allocation2 + $0x128] sm:$0xff]  ;;  %v155_v45 = vld [vmem:[#allocation2 + $0x320] sm:$0xff]  ;;  %v232_v48 = vpack.c.bf16 %v154_v42, %v153_v41 }
  0x52   :  { %v156_v46 = vld [vmem:[#allocation2 + $0x328] sm:$0xff]  ;;  %v201_v49 = vpack.c.bf16 %v92_v44, %v91_v43  ;;  %v95_v55 = vld [vmem:[#allocation2 + $0x140] sm:$0xff] }
  0x53   :  { %v233_v50 = vpack.c.bf16 %v156_v46, %v155_v45  ;;  %v96_v56 = vld [vmem:[#allocation2 + $0x148] sm:$0xff]  ;;  %v159_v57 = vld [vmem:[#allocation2 + $0x340] sm:$0xff] }
  0x54   :  { %v160_v58 = vld [vmem:[#allocation2 + $0x348] sm:$0xff]  ;;  %v203_v61 = vpack.c.bf16 %v96_v56, %v95_v55  ;;  %v99_v3 = vld [vmem:[#allocation2 + $0x160] sm:$0xff] }
  0x55   :  { %2189 = vmatmul.mubr.msk.bf16.gmra.mrb[12].mxu0 %vm262_vm0, %v190_v51  ;;  %v93_v51 = vld [vmem:[#allocation2 + $0x130] sm:$0xff]  ;;  %v235_v62 = vpack.c.bf16 %v160_v58, %v159_v57  ;;  %v100_v4 = vld [vmem:[#allocation2 + $0x168] sm:$0xff]  ;;  %v163_v5 = vld [vmem:[#allocation2 + $0x360] sm:$0xff] }
  0x56   :  { %2253 = vmatmul.mubr.msk.bf16.gmra.mrb[12].mxu1 %vm262_vm0, %v222_v52  ;;  %2192 = vmatprep.mubr.msk.bf16.mxu0 %vm262_vm0, %v191_v53  ;;  %v94_v52 = vld [vmem:[#allocation2 + $0x138] sm:$0xff]  ;;  %v157_v53 = vld [vmem:[#allocation2 + $0x330] sm:$0xff]  ;;  %v164_v6 = vld [vmem:[#allocation2 + $0x368] sm:$0xff]  ;;  %v205_v9 = vpack.c.bf16 %v100_v4, %v99_v3 }
  0x57   :  { %2256 = vmatprep.mubr.msk.bf16.mxu1 %vm262_vm0, %v223_v54  ;;  %v158_v54 = vld [vmem:[#allocation2 + $0x338] sm:$0xff]  ;;  %v202_v59 = vpack.c.bf16 %v94_v52, %v93_v51  ;;  %v237_v10 = vpack.c.bf16 %v164_v6, %v163_v5  ;;  %v103_v15 = vld [vmem:[#allocation2 + $0x180] sm:$0xff]  ;;  %v104_v16 = vld [vmem:[#allocation2 + $0x188] sm:$0xff] }
  0x58   :  { %v234_v60 = vpack.c.bf16 %v158_v54, %v157_v53  ;;  %v167_v17 = vld [vmem:[#allocation2 + $0x380] sm:$0xff]  ;;  %v168_v18 = vld [vmem:[#allocation2 + $0x388] sm:$0xff]  ;;  %v207_v21 = vpack.c.bf16 %v104_v16, %v103_v15 }
  0x59   :  { %v239_v22 = vpack.c.bf16 %v168_v18, %v167_v17  ;;  %v107_v27 = vld [vmem:[#allocation2 + $0x1a0] sm:$0xff]  ;;  %v108_v28 = vld [vmem:[#allocation2 + $0x1a8] sm:$0xff] }
  0x5a   :  { %v171_v29 = vld [vmem:[#allocation2 + $0x3a0] sm:$0xff]  ;;  %v172_v30 = vld [vmem:[#allocation2 + $0x3a8] sm:$0xff]  ;;  %v209_v33 = vpack.c.bf16 %v108_v28, %v107_v27 }
  0x5b   :  { %v241_v34 = vpack.c.bf16 %v172_v30, %v171_v29  ;;  %v111_v39 = vld [vmem:[#allocation2 + $0x1c0] sm:$0xff]  ;;  %v112_v40 = vld [vmem:[#allocation2 + $0x1c8] sm:$0xff] }
  0x5c   :  { %v175_v41 = vld [vmem:[#allocation2 + $0x3c0] sm:$0xff]  ;;  %v176_v42 = vld [vmem:[#allocation2 + $0x3c8] sm:$0xff]  ;;  %v211_v45 = vpack.c.bf16 %v112_v40, %v111_v39 }
  0x5d   :  { %2193 = vmatmul.mubr.msk.bf16.gmra.mrb[16].mxu0 %vm262_vm0, %v192_v63  ;;  %v97_v63 = vld [vmem:[#allocation2 + $0x150] sm:$0xff]  ;;  %v243_v46 = vpack.c.bf16 %v176_v42, %v175_v41  ;;  %v115_v51 = vld [vmem:[#allocation2 + $0x1e0] sm:$0xff]  ;;  %v116_v52 = vld [vmem:[#allocation2 + $0x1e8] sm:$0xff] }
  0x5e   :  { %2257 = vmatmul.mubr.msk.bf16.gmra.mrb[16].mxu1 %vm262_vm0, %v224_v0  ;;  %2196 = vmatprep.mubr.msk.bf16.mxu0 %vm262_vm0, %v193_v1  ;;  %v98_v0 = vld [vmem:[#allocation2 + $0x158] sm:$0xff]  ;;  %v161_v1 = vld [vmem:[#allocation2 + $0x350] sm:$0xff]  ;;  %v179_v53 = vld [vmem:[#allocation2 + $0x3e0] sm:$0xff]  ;;  %v213_v57 = vpack.c.bf16 %v116_v52, %v115_v51 }
  0x5f   :  { %2260 = vmatprep.mubr.msk.bf16.mxu1 %vm262_vm0, %v225_v2  ;;  %v162_v2 = vld [vmem:[#allocation2 + $0x358] sm:$0xff]  ;;  %v204_v7 = vpack.c.bf16 %v98_v0, %v97_v63  ;;  %v180_v54 = vld [vmem:[#allocation2 + $0x3e8] sm:$0xff] }
  0x60   :  { %v236_v8 = vpack.c.bf16 %v162_v2, %v161_v1  ;;  %v245_v58 = vpack.c.bf16 %v180_v54, %v179_v53  ;;  %v2541_v1 = vld [vmem:[#allocation7] ss:$0 sm:$0xff] }
  0x65   :  { %2197 = vmatmul.mubr.msk.bf16.gmra.mrb[20].mxu0 %vm262_vm0, %v194_v11  ;;  %v101_v11 = vld [vmem:[#allocation2 + $0x170] sm:$0xff] }
  0x66   :  { %2261 = vmatmul.mubr.msk.bf16.gmra.mrb[20].mxu1 %vm262_vm0, %v226_v12  ;;  %2200 = vmatprep.mubr.msk.bf16.mxu0 %vm262_vm0, %v195_v13  ;;  %v102_v12 = vld [vmem:[#allocation2 + $0x178] sm:$0xff]  ;;  %v165_v13 = vld [vmem:[#allocation2 + $0x370] sm:$0xff] }
  0x67   :  { %2264 = vmatprep.mubr.msk.bf16.mxu1 %vm262_vm0, %v227_v14  ;;  %v166_v14 = vld [vmem:[#allocation2 + $0x378] sm:$0xff]  ;;  %v206_v19 = vpack.c.bf16 %v102_v12, %v101_v11 }
  0x68   :  { %v238_v20 = vpack.c.bf16 %v166_v14, %v165_v13 }
  0x6d   :  { %2201 = vmatmul.mubr.msk.bf16.gmra.mrb[24].mxu0 %vm262_vm0, %v196_v23  ;;  %v105_v23 = vld [vmem:[#allocation2 + $0x190] sm:$0xff] }
  0x6e   :  { %2265 = vmatmul.mubr.msk.bf16.gmra.mrb[24].mxu1 %vm262_vm0, %v228_v24  ;;  %2204 = vmatprep.mubr.msk.bf16.mxu0 %vm262_vm0, %v197_v25  ;;  %v106_v24 = vld [vmem:[#allocation2 + $0x198] sm:$0xff]  ;;  %v169_v25 = vld [vmem:[#allocation2 + $0x390] sm:$0xff] }
  0x6f   :  { %2268 = vmatprep.mubr.msk.bf16.mxu1 %vm262_vm0, %v229_v26  ;;  %v170_v26 = vld [vmem:[#allocation2 + $0x398] sm:$0xff]  ;;  %v208_v31 = vpack.c.bf16 %v106_v24, %v105_v23 }
  0x70   :  { %v240_v32 = vpack.c.bf16 %v170_v26, %v169_v25 }
  0x75   :  { %2205 = vmatmul.mubr.msk.bf16.gmra.mrb[28].mxu0 %vm262_vm0, %v198_v35  ;;  %v109_v35 = vld [vmem:[#allocation2 + $0x1b0] sm:$0xff] }
  0x76   :  { %2269 = vmatmul.mubr.msk.bf16.gmra.mrb[28].mxu1 %vm262_vm0, %v230_v36  ;;  %2208 = vmatprep.mubr.msk.bf16.mxu0 %vm262_vm0, %v199_v37  ;;  %v110_v36 = vld [vmem:[#allocation2 + $0x1b8] sm:$0xff]  ;;  %v173_v37 = vld [vmem:[#allocation2 + $0x3b0] sm:$0xff] }
  0x77   :  { %2272 = vmatprep.mubr.msk.bf16.mxu1 %vm262_vm0, %v231_v38  ;;  %v174_v38 = vld [vmem:[#allocation2 + $0x3b8] sm:$0xff]  ;;  %v210_v43 = vpack.c.bf16 %v110_v36, %v109_v35 }
  0x78   :  { %v242_v44 = vpack.c.bf16 %v174_v38, %v173_v37 }
  0x7d   :  { %2209 = vmatmul.mubr.msk.bf16.gmra.mrb[32].mxu0 %vm262_vm0, %v200_v47  ;;  %v113_v47 = vld [vmem:[#allocation2 + $0x1d0] sm:$0xff] }
  0x7e   :  { %2273 = vmatmul.mubr.msk.bf16.gmra.mrb[32].mxu1 %vm262_vm0, %v232_v48  ;;  %2212 = vmatprep.mubr.msk.bf16.mxu0 %vm262_vm0, %v201_v49  ;;  %v114_v48 = vld [vmem:[#allocation2 + $0x1d8] sm:$0xff]  ;;  %v177_v49 = vld [vmem:[#allocation2 + $0x3d0] sm:$0xff] }
  0x7f   :  { %2276 = vmatprep.mubr.msk.bf16.mxu1 %vm262_vm0, %v233_v50  ;;  %v178_v50 = vld [vmem:[#allocation2 + $0x3d8] sm:$0xff]  ;;  %v212_v55 = vpack.c.bf16 %v114_v48, %v113_v47 }
  0x80   :  { %v244_v56 = vpack.c.bf16 %v178_v50, %v177_v49 }
  0x85   :  { %2213 = vmatmul.mubr.msk.bf16.gmra.mrb[36].mxu0 %vm262_vm0, %v202_v59  ;;  %v117_v59 = vld [vmem:[#allocation2 + $0x1f0] sm:$0xff] }
  0x86   :  { %2277 = vmatmul.mubr.msk.bf16.gmra.mrb[36].mxu1 %vm262_vm0, %v234_v60  ;;  %2216 = vmatprep.mubr.msk.bf16.mxu0 %vm262_vm0, %v203_v61  ;;  %v118_v60 = vld [vmem:[#allocation2 + $0x1f8] sm:$0xff]  ;;  %v181_v61 = vld [vmem:[#allocation2 + $0x3f0] sm:$0xff] }
  0x87   :  { %2280 = vmatprep.mubr.msk.bf16.mxu1 %vm262_vm0, %v235_v62  ;;  %v182_v62 = vld [vmem:[#allocation2 + $0x3f8] sm:$0xff]  ;;  %v214_v63 = vpack.c.bf16 %v118_v60, %v117_v59 }
  0x88   :  { %v246_v0 = vpack.c.bf16 %v182_v62, %v181_v61 }
  0x8d   :  { %2217 = vmatmul.mubr.msk.bf16.gmra.mrb[40].mxu0 %vm262_vm0, %v204_v7 }
  0x8e   :  { %2281 = vmatmul.mubr.msk.bf16.gmra.mrb[40].mxu1 %vm262_vm0, %v236_v8  ;;  %2220 = vmatprep.mubr.msk.bf16.mxu0 %vm262_vm0, %v205_v9 }
  0x8f   :  { %2284 = vmatprep.mubr.msk.bf16.mxu1 %vm262_vm0, %v237_v10 }
  0x95   :  { %2221 = vmatmul.mubr.msk.bf16.gmra.mrb[44].mxu0 %vm262_vm0, %v206_v19 }
  0x96   :  { %2285 = vmatmul.mubr.msk.bf16.gmra.mrb[44].mxu1 %vm262_vm0, %v238_v20  ;;  %2224 = vmatprep.mubr.msk.bf16.mxu0 %vm262_vm0, %v207_v21 }
  0x97   :  { %2288 = vmatprep.mubr.msk.bf16.mxu1 %vm262_vm0, %v239_v22 }
  0x9d   :  { %2225 = vmatmul.mubr.msk.bf16.gmra.mrb[48].mxu0 %vm262_vm0, %v208_v31 }
  0x9e   :  { %2289 = vmatmul.mubr.msk.bf16.gmra.mrb[48].mxu1 %vm262_vm0, %v240_v32  ;;  %2228 = vmatprep.mubr.msk.bf16.mxu0 %vm262_vm0, %v209_v33 }
  0x9f   :  { %2292 = vmatprep.mubr.msk.bf16.mxu1 %vm262_vm0, %v241_v34 }
  0xa5   :  { %2229 = vmatmul.mubr.msk.bf16.gmra.mrb[52].mxu0 %vm262_vm0, %v210_v43 }
  0xa6   :  { %2293 = vmatmul.mubr.msk.bf16.gmra.mrb[52].mxu1 %vm262_vm0, %v242_v44  ;;  %2232 = vmatprep.mubr.msk.bf16.mxu0 %vm262_vm0, %v211_v45 }
  0xa7   :  { %2296 = vmatprep.mubr.msk.bf16.mxu1 %vm262_vm0, %v243_v46 }
  0xad   :  { %2233 = vmatmul.mubr.msk.bf16.gmra.mrb[56].mxu0 %vm262_vm0, %v212_v55 }
  0xae   :  { %2297 = vmatmul.mubr.msk.bf16.gmra.mrb[56].mxu1 %vm262_vm0, %v244_v56  ;;  %2236 = vmatprep.mubr.msk.bf16.mxu0 %vm262_vm0, %v213_v57 }
  0xaf   :  { %2300 = vmatprep.mubr.msk.bf16.mxu1 %vm262_vm0, %v245_v58 }
  0xb5   :  { %2237 = vmatmul.mubr.msk.bf16.gmra.mrb[60].mxu0 %vm262_vm0, %v214_v63 }
  0xb6   :  { %2301 = vmatmul.mubr.msk.bf16.gmra.mrb[60].mxu1 %vm262_vm0, %v246_v0 }
 0x110   :  { %v2178_v2 = vpop.f32.mrb[0].mxu0 }
 0x111   :  { %v2242_v3 = vpop.f32.mrb[0].mxu1  ;;  %v498_v4 = vadd.f32 %v2178_v2, %v2541_v1  ;;  %v489_v6 = vpop.f32.mrb[1].mxu0 }
 0x112   :  { %v754_v5 = vadd.f32 %v2242_v3, %v2541_v1  ;;  %v745_v7 = vpop.f32.mrb[1].mxu1  ;;  %v490_v8 = vadd.f32 %v2541_v1, %v489_v6  ;;  %v2179_v10 = vpop.f32.mrb[2].mxu0 }
 0x113   :  { %v746_v9 = vadd.f32 %v2541_v1, %v745_v7  ;;  %v2243_v11 = vpop.f32.mrb[2].mxu1  ;;  %v1002_v12 = vmax.f32 %v498_v4, 0.0  ;;  %v501_v14 = vadd.f32 %v2179_v10, %v2541_v1  ;;  %v492_v16 = vpop.f32.mrb[3].mxu0 }
 0x114   :  { %v1066_v13 = vmax.f32 %v754_v5, 0.0  ;;  %v757_v15 = vadd.f32 %v2243_v11, %v2541_v1  ;;  %v748_v17 = vpop.f32.mrb[3].mxu1  ;;  %v1000_v18 = vmax.f32 %v490_v8, 0.0  ;;  %v493_v20 = vadd.f32 %v2541_v1, %v492_v16 }
 0x115   :  { %v1064_v19 = vmax.f32 %v746_v9, 0.0  ;;  %v749_v21 = vadd.f32 %v2541_v1, %v748_v17  ;;  %v1983_v22 = vpack.c.bf16 %v1002_v12, %v1002_v12  ;;  %v1003_v24 = vmax.f32 %v501_v14, 0.0 }
 0x116   :  { %v2047_v23 = vpack.c.bf16 %v1066_v13, %v1066_v13  ;;  %v1067_v25 = vmax.f32 %v757_v15, 0.0  ;;  %v1981_v26 = vpack.c.bf16 %v1000_v18, %v1000_v18  ;;  %v1001_v28 = vmax.f32 %v493_v20, 0.0 }
 0x117   :  { %v2045_v27 = vpack.c.bf16 %v1064_v19, %v1064_v19  ;;  %v1065_v29 = vmax.f32 %v749_v21, 0.0  ;;  %1643 = vst.msk [vmem:[#allocation8 + $0x8] sm:$0xf] %vm1640_vm1, %v1983_v22  ;;  %v1984_v30 = vpack.c.bf16 %v1003_v24, %v1003_v24 }
 0x118   :  { %1707 = vst.msk [vmem:[#allocation8 + $0x108] sm:$0xf] %vm1640_vm1, %v2047_v23  ;;  %v2048_v31 = vpack.c.bf16 %v1067_v25, %v1067_v25  ;;  %1641 = vst.msk [vmem:[#allocation8] sm:$0xf] %vm1640_vm1, %v1981_v26  ;;  %v1982_v32 = vpack.c.bf16 %v1001_v28, %v1001_v28  ;;  %v2182_v34 = vpop.f32.mrb[4].mxu0 }
 0x119   :  { %1705 = vst.msk [vmem:[#allocation8 + $0x100] sm:$0xf] %vm1640_vm1, %v2045_v27  ;;  %v2046_v33 = vpack.c.bf16 %v1065_v29, %v1065_v29  ;;  %v2246_v35 = vpop.f32.mrb[4].mxu1  ;;  %1644 = vst.msk [vmem:[#allocation8 + $0xc] sm:$0xf] %vm1640_vm1, %v1984_v30  ;;  %v514_v36 = vadd.f32 %v2182_v34, %v2541_v1  ;;  %v505_v38 = vpop.f32.mrb[5].mxu0 }
 0x11a   :  { %1708 = vst.msk [vmem:[#allocation8 + $0x10c] sm:$0xf] %vm1640_vm1, %v2048_v31  ;;  %v770_v37 = vadd.f32 %v2246_v35, %v2541_v1  ;;  %v761_v39 = vpop.f32.mrb[5].mxu1  ;;  %1642 = vst.msk [vmem:[#allocation8 + $0x4] sm:$0xf] %vm1640_vm1, %v1982_v32  ;;  %v506_v40 = vadd.f32 %v2541_v1, %v505_v38  ;;  %v2183_v42 = vpop.f32.mrb[6].mxu0 }
 0x11b   :  { %1706 = vst.msk [vmem:[#allocation8 + $0x104] sm:$0xf] %vm1640_vm1, %v2046_v33  ;;  %v762_v41 = vadd.f32 %v2541_v1, %v761_v39  ;;  %v2247_v43 = vpop.f32.mrb[6].mxu1  ;;  %v1006_v44 = vmax.f32 %v514_v36, 0.0  ;;  %v517_v46 = vadd.f32 %v2183_v42, %v2541_v1  ;;  %v508_v48 = vpop.f32.mrb[7].mxu0 }
 0x11c   :  { %v1070_v45 = vmax.f32 %v770_v37, 0.0  ;;  %v773_v47 = vadd.f32 %v2247_v43, %v2541_v1  ;;  %v764_v49 = vpop.f32.mrb[7].mxu1  ;;  %v1004_v50 = vmax.f32 %v506_v40, 0.0  ;;  %v509_v52 = vadd.f32 %v2541_v1, %v508_v48 }
 0x11d   :  { %v1068_v51 = vmax.f32 %v762_v41, 0.0  ;;  %v765_v53 = vadd.f32 %v2541_v1, %v764_v49  ;;  %v1987_v54 = vpack.c.bf16 %v1006_v44, %v1006_v44  ;;  %v1007_v56 = vmax.f32 %v517_v46, 0.0 }
 0x11e   :  { %v2051_v55 = vpack.c.bf16 %v1070_v45, %v1070_v45  ;;  %v1071_v57 = vmax.f32 %v773_v47, 0.0  ;;  %v1985_v58 = vpack.c.bf16 %v1004_v50, %v1004_v50  ;;  %v1005_v60 = vmax.f32 %v509_v52, 0.0 }
 0x11f   :  { %v2049_v59 = vpack.c.bf16 %v1068_v51, %v1068_v51  ;;  %v1069_v61 = vmax.f32 %v765_v53, 0.0  ;;  %1647 = vst.msk [vmem:[#allocation8 + $0x18] sm:$0xf] %vm1640_vm1, %v1987_v54  ;;  %v1988_v62 = vpack.c.bf16 %v1007_v56, %v1007_v56 }
 0x120   :  { %1711 = vst.msk [vmem:[#allocation8 + $0x118] sm:$0xf] %vm1640_vm1, %v2051_v55  ;;  %v2052_v63 = vpack.c.bf16 %v1071_v57, %v1071_v57  ;;  %1645 = vst.msk [vmem:[#allocation8 + $0x10] sm:$0xf] %vm1640_vm1, %v1985_v58  ;;  %v1986_v0 = vpack.c.bf16 %v1005_v60, %v1005_v60  ;;  %v2186_v3 = vpop.f32.mrb[8].mxu0 }
 0x121   :  { %1709 = vst.msk [vmem:[#allocation8 + $0x110] sm:$0xf] %vm1640_vm1, %v2049_v59  ;;  %v2050_v2 = vpack.c.bf16 %v1069_v61, %v1069_v61  ;;  %v2250_v4 = vpop.f32.mrb[8].mxu1  ;;  %1648 = vst.msk [vmem:[#allocation8 + $0x1c] sm:$0xf] %vm1640_vm1, %v1988_v62  ;;  %v530_v5 = vadd.f32 %v2186_v3, %v2541_v1  ;;  %v521_v7 = vpop.f32.mrb[9].mxu0 }
 0x122   :  { %1712 = vst.msk [vmem:[#allocation8 + $0x11c] sm:$0xf] %vm1640_vm1, %v2052_v63  ;;  %v786_v6 = vadd.f32 %v2250_v4, %v2541_v1  ;;  %v777_v8 = vpop.f32.mrb[9].mxu1  ;;  %1646 = vst.msk [vmem:[#allocation8 + $0x14] sm:$0xf] %vm1640_vm1, %v1986_v0  ;;  %v522_v9 = vadd.f32 %v2541_v1, %v521_v7  ;;  %v2187_v11 = vpop.f32.mrb[10].mxu0 }
 0x123   :  { %1710 = vst.msk [vmem:[#allocation8 + $0x114] sm:$0xf] %vm1640_vm1, %v2050_v2  ;;  %v778_v10 = vadd.f32 %v2541_v1, %v777_v8  ;;  %v2251_v12 = vpop.f32.mrb[10].mxu1  ;;  %v1010_v13 = vmax.f32 %v530_v5, 0.0  ;;  %v533_v15 = vadd.f32 %v2187_v11, %v2541_v1  ;;  %v524_v17 = vpop.f32.mrb[11].mxu0 }
 0x124   :  { %v1074_v14 = vmax.f32 %v786_v6, 0.0  ;;  %v789_v16 = vadd.f32 %v2251_v12, %v2541_v1  ;;  %v780_v18 = vpop.f32.mrb[11].mxu1  ;;  %v1008_v19 = vmax.f32 %v522_v9, 0.0  ;;  %v525_v21 = vadd.f32 %v2541_v1, %v524_v17 }
 0x125   :  { %v1072_v20 = vmax.f32 %v778_v10, 0.0  ;;  %v781_v22 = vadd.f32 %v2541_v1, %v780_v18  ;;  %v1991_v23 = vpack.c.bf16 %v1010_v13, %v1010_v13  ;;  %v1011_v25 = vmax.f32 %v533_v15, 0.0 }
 0x126   :  { %v2055_v24 = vpack.c.bf16 %v1074_v14, %v1074_v14  ;;  %v1075_v26 = vmax.f32 %v789_v16, 0.0  ;;  %v1989_v27 = vpack.c.bf16 %v1008_v19, %v1008_v19  ;;  %v1009_v29 = vmax.f32 %v525_v21, 0.0 }
 0x127   :  { %v2053_v28 = vpack.c.bf16 %v1072_v20, %v1072_v20  ;;  %v1073_v30 = vmax.f32 %v781_v22, 0.0  ;;  %1651 = vst.msk [vmem:[#allocation8 + $0x28] sm:$0xf] %vm1640_vm1, %v1991_v23  ;;  %v1992_v31 = vpack.c.bf16 %v1011_v25, %v1011_v25 }
 0x128   :  { %1715 = vst.msk [vmem:[#allocation8 + $0x128] sm:$0xf] %vm1640_vm1, %v2055_v24  ;;  %v2056_v32 = vpack.c.bf16 %v1075_v26, %v1075_v26  ;;  %1649 = vst.msk [vmem:[#allocation8 + $0x20] sm:$0xf] %vm1640_vm1, %v1989_v27  ;;  %v1990_v33 = vpack.c.bf16 %v1009_v29, %v1009_v29  ;;  %v2190_v35 = vpop.f32.mrb[12].mxu0 }
 0x129   :  { %1713 = vst.msk [vmem:[#allocation8 + $0x120] sm:$0xf] %vm1640_vm1, %v2053_v28  ;;  %v2054_v34 = vpack.c.bf16 %v1073_v30, %v1073_v30  ;;  %v2254_v36 = vpop.f32.mrb[12].mxu1  ;;  %1652 = vst.msk [vmem:[#allocation8 + $0x2c] sm:$0xf] %vm1640_vm1, %v1992_v31  ;;  %v546_v37 = vadd.f32 %v2190_v35, %v2541_v1  ;;  %v537_v39 = vpop.f32.mrb[13].mxu0 }
 0x12a   :  { %1716 = vst.msk [vmem:[#allocation8 + $0x12c] sm:$0xf] %vm1640_vm1, %v2056_v32  ;;  %v802_v38 = vadd.f32 %v2254_v36, %v2541_v1  ;;  %v793_v40 = vpop.f32.mrb[13].mxu1  ;;  %1650 = vst.msk [vmem:[#allocation8 + $0x24] sm:$0xf] %vm1640_vm1, %v1990_v33  ;;  %v538_v41 = vadd.f32 %v2541_v1, %v537_v39  ;;  %v2191_v43 = vpop.f32.mrb[14].mxu0 }
 0x12b   :  { %1714 = vst.msk [vmem:[#allocation8 + $0x124] sm:$0xf] %vm1640_vm1, %v2054_v34  ;;  %v794_v42 = vadd.f32 %v2541_v1, %v793_v40  ;;  %v2255_v44 = vpop.f32.mrb[14].mxu1  ;;  %v1014_v45 = vmax.f32 %v546_v37, 0.0  ;;  %v549_v47 = vadd.f32 %v2191_v43, %v2541_v1  ;;  %v540_v49 = vpop.f32.mrb[15].mxu0 }
 0x12c   :  { %v1078_v46 = vmax.f32 %v802_v38, 0.0  ;;  %v805_v48 = vadd.f32 %v2255_v44, %v2541_v1  ;;  %v796_v50 = vpop.f32.mrb[15].mxu1  ;;  %v1012_v51 = vmax.f32 %v538_v41, 0.0  ;;  %v541_v53 = vadd.f32 %v2541_v1, %v540_v49 }
 0x12d   :  { %v1076_v52 = vmax.f32 %v794_v42, 0.0  ;;  %v797_v54 = vadd.f32 %v2541_v1, %v796_v50  ;;  %v1995_v55 = vpack.c.bf16 %v1014_v45, %v1014_v45  ;;  %v1015_v57 = vmax.f32 %v549_v47, 0.0 }
 0x12e   :  { %v2059_v56 = vpack.c.bf16 %v1078_v46, %v1078_v46  ;;  %v1079_v58 = vmax.f32 %v805_v48, 0.0  ;;  %v1993_v59 = vpack.c.bf16 %v1012_v51, %v1012_v51  ;;  %v1013_v61 = vmax.f32 %v541_v53, 0.0 }
 0x12f   :  { %v2057_v60 = vpack.c.bf16 %v1076_v52, %v1076_v52  ;;  %v1077_v62 = vmax.f32 %v797_v54, 0.0  ;;  %1655 = vst.msk [vmem:[#allocation8 + $0x38] sm:$0xf] %vm1640_vm1, %v1995_v55  ;;  %v1996_v63 = vpack.c.bf16 %v1015_v57, %v1015_v57 }
 0x130   :  { %1719 = vst.msk [vmem:[#allocation8 + $0x138] sm:$0xf] %vm1640_vm1, %v2059_v56  ;;  %v2060_v0 = vpack.c.bf16 %v1079_v58, %v1079_v58  ;;  %1653 = vst.msk [vmem:[#allocation8 + $0x30] sm:$0xf] %vm1640_vm1, %v1993_v59  ;;  %v1994_v2 = vpack.c.bf16 %v1013_v61, %v1013_v61  ;;  %v2194_v4 = vpop.f32.mrb[16].mxu0 }
 0x131   :  { %1717 = vst.msk [vmem:[#allocation8 + $0x130] sm:$0xf] %vm1640_vm1, %v2057_v60  ;;  %v2058_v3 = vpack.c.bf16 %v1077_v62, %v1077_v62  ;;  %v2258_v5 = vpop.f32.mrb[16].mxu1  ;;  %1656 = vst.msk [vmem:[#allocation8 + $0x3c] sm:$0xf] %vm1640_vm1, %v1996_v63  ;;  %v562_v6 = vadd.f32 %v2194_v4, %v2541_v1  ;;  %v553_v8 = vpop.f32.mrb[17].mxu0 }
 0x132   :  { %1720 = vst.msk [vmem:[#allocation8 + $0x13c] sm:$0xf] %vm1640_vm1, %v2060_v0  ;;  %v818_v7 = vadd.f32 %v2258_v5, %v2541_v1  ;;  %v809_v9 = vpop.f32.mrb[17].mxu1  ;;  %1654 = vst.msk [vmem:[#allocation8 + $0x34] sm:$0xf] %vm1640_vm1, %v1994_v2  ;;  %v554_v10 = vadd.f32 %v2541_v1, %v553_v8  ;;  %v2195_v12 = vpop.f32.mrb[18].mxu0 }
 0x133   :  { %1718 = vst.msk [vmem:[#allocation8 + $0x134] sm:$0xf] %vm1640_vm1, %v2058_v3  ;;  %v810_v11 = vadd.f32 %v2541_v1, %v809_v9  ;;  %v2259_v13 = vpop.f32.mrb[18].mxu1  ;;  %v1018_v14 = vmax.f32 %v562_v6, 0.0  ;;  %v565_v16 = vadd.f32 %v2195_v12, %v2541_v1  ;;  %v556_v18 = vpop.f32.mrb[19].mxu0 }
 0x134   :  { %v1082_v15 = vmax.f32 %v818_v7, 0.0  ;;  %v821_v17 = vadd.f32 %v2259_v13, %v2541_v1  ;;  %v812_v19 = vpop.f32.mrb[19].mxu1  ;;  %v1016_v20 = vmax.f32 %v554_v10, 0.0  ;;  %v557_v22 = vadd.f32 %v2541_v1, %v556_v18 }
 0x135   :  { %v1080_v21 = vmax.f32 %v810_v11, 0.0  ;;  %v813_v23 = vadd.f32 %v2541_v1, %v812_v19  ;;  %v1999_v24 = vpack.c.bf16 %v1018_v14, %v1018_v14  ;;  %v1019_v26 = vmax.f32 %v565_v16, 0.0 }
 0x136   :  { %v2063_v25 = vpack.c.bf16 %v1082_v15, %v1082_v15  ;;  %v1083_v27 = vmax.f32 %v821_v17, 0.0  ;;  %v1997_v28 = vpack.c.bf16 %v1016_v20, %v1016_v20  ;;  %v1017_v30 = vmax.f32 %v557_v22, 0.0 }
 0x137   :  { %v2061_v29 = vpack.c.bf16 %v1080_v21, %v1080_v21  ;;  %v1081_v31 = vmax.f32 %v813_v23, 0.0  ;;  %1659 = vst.msk [vmem:[#allocation8 + $0x48] sm:$0xf] %vm1640_vm1, %v1999_v24  ;;  %v2000_v32 = vpack.c.bf16 %v1019_v26, %v1019_v26 }
 0x138   :  { %1723 = vst.msk [vmem:[#allocation8 + $0x148] sm:$0xf] %vm1640_vm1, %v2063_v25  ;;  %v2064_v33 = vpack.c.bf16 %v1083_v27, %v1083_v27  ;;  %1657 = vst.msk [vmem:[#allocation8 + $0x40] sm:$0xf] %vm1640_vm1, %v1997_v28  ;;  %v1998_v34 = vpack.c.bf16 %v1017_v30, %v1017_v30  ;;  %v2198_v36 = vpop.f32.mrb[20].mxu0 }
 0x139   :  { %1721 = vst.msk [vmem:[#allocation8 + $0x140] sm:$0xf] %vm1640_vm1, %v2061_v29  ;;  %v2062_v35 = vpack.c.bf16 %v1081_v31, %v1081_v31  ;;  %v2262_v37 = vpop.f32.mrb[20].mxu1  ;;  %1660 = vst.msk [vmem:[#allocation8 + $0x4c] sm:$0xf] %vm1640_vm1, %v2000_v32  ;;  %v578_v38 = vadd.f32 %v2198_v36, %v2541_v1  ;;  %v569_v40 = vpop.f32.mrb[21].mxu0 }
 0x13a   :  { %1724 = vst.msk [vmem:[#allocation8 + $0x14c] sm:$0xf] %vm1640_vm1, %v2064_v33  ;;  %v834_v39 = vadd.f32 %v2262_v37, %v2541_v1  ;;  %v825_v41 = vpop.f32.mrb[21].mxu1  ;;  %1658 = vst.msk [vmem:[#allocation8 + $0x44] sm:$0xf] %vm1640_vm1, %v1998_v34  ;;  %v570_v42 = vadd.f32 %v2541_v1, %v569_v40  ;;  %v2199_v44 = vpop.f32.mrb[22].mxu0 }
 0x13b   :  { %1722 = vst.msk [vmem:[#allocation8 + $0x144] sm:$0xf] %vm1640_vm1, %v2062_v35  ;;  %v826_v43 = vadd.f32 %v2541_v1, %v825_v41  ;;  %v2263_v45 = vpop.f32.mrb[22].mxu1  ;;  %v1022_v46 = vmax.f32 %v578_v38, 0.0  ;;  %v581_v48 = vadd.f32 %v2199_v44, %v2541_v1  ;;  %v572_v50 = vpop.f32.mrb[23].mxu0 }
 0x13c   :  { %v1086_v47 = vmax.f32 %v834_v39, 0.0  ;;  %v837_v49 = vadd.f32 %v2263_v45, %v2541_v1  ;;  %v828_v51 = vpop.f32.mrb[23].mxu1  ;;  %v1020_v52 = vmax.f32 %v570_v42, 0.0  ;;  %v573_v54 = vadd.f32 %v2541_v1, %v572_v50 }
 0x13d   :  { %v1084_v53 = vmax.f32 %v826_v43, 0.0  ;;  %v829_v55 = vadd.f32 %v2541_v1, %v828_v51  ;;  %v2003_v56 = vpack.c.bf16 %v1022_v46, %v1022_v46  ;;  %v1023_v58 = vmax.f32 %v581_v48, 0.0 }
 0x13e   :  { %v2067_v57 = vpack.c.bf16 %v1086_v47, %v1086_v47  ;;  %v1087_v59 = vmax.f32 %v837_v49, 0.0  ;;  %v2001_v60 = vpack.c.bf16 %v1020_v52, %v1020_v52  ;;  %v1021_v62 = vmax.f32 %v573_v54, 0.0 }
 0x13f   :  { %v2065_v61 = vpack.c.bf16 %v1084_v53, %v1084_v53  ;;  %v1085_v63 = vmax.f32 %v829_v55, 0.0  ;;  %1663 = vst.msk [vmem:[#allocation8 + $0x58] sm:$0xf] %vm1640_vm1, %v2003_v56  ;;  %v2004_v0 = vpack.c.bf16 %v1023_v58, %v1023_v58 }
 0x140   :  { %1727 = vst.msk [vmem:[#allocation8 + $0x158] sm:$0xf] %vm1640_vm1, %v2067_v57  ;;  %v2068_v2 = vpack.c.bf16 %v1087_v59, %v1087_v59  ;;  %1661 = vst.msk [vmem:[#allocation8 + $0x50] sm:$0xf] %vm1640_vm1, %v2001_v60  ;;  %v2002_v3 = vpack.c.bf16 %v1021_v62, %v1021_v62  ;;  %v2202_v5 = vpop.f32.mrb[24].mxu0 }
 0x141   :  { %1725 = vst.msk [vmem:[#allocation8 + $0x150] sm:$0xf] %vm1640_vm1, %v2065_v61  ;;  %v2066_v4 = vpack.c.bf16 %v1085_v63, %v1085_v63  ;;  %v2266_v6 = vpop.f32.mrb[24].mxu1  ;;  %1664 = vst.msk [vmem:[#allocation8 + $0x5c] sm:$0xf] %vm1640_vm1, %v2004_v0  ;;  %v594_v7 = vadd.f32 %v2202_v5, %v2541_v1  ;;  %v585_v9 = vpop.f32.mrb[25].mxu0 }
 0x142   :  { %1728 = vst.msk [vmem:[#allocation8 + $0x15c] sm:$0xf] %vm1640_vm1, %v2068_v2  ;;  %v850_v8 = vadd.f32 %v2266_v6, %v2541_v1  ;;  %v841_v10 = vpop.f32.mrb[25].mxu1  ;;  %1662 = vst.msk [vmem:[#allocation8 + $0x54] sm:$0xf] %vm1640_vm1, %v2002_v3  ;;  %v586_v11 = vadd.f32 %v2541_v1, %v585_v9  ;;  %v2203_v13 = vpop.f32.mrb[26].mxu0 }
 0x143   :  { %1726 = vst.msk [vmem:[#allocation8 + $0x154] sm:$0xf] %vm1640_vm1, %v2066_v4  ;;  %v842_v12 = vadd.f32 %v2541_v1, %v841_v10  ;;  %v2267_v14 = vpop.f32.mrb[26].mxu1  ;;  %v1026_v15 = vmax.f32 %v594_v7, 0.0  ;;  %v597_v17 = vadd.f32 %v2203_v13, %v2541_v1  ;;  %v588_v19 = vpop.f32.mrb[27].mxu0 }
 0x144   :  { %v1090_v16 = vmax.f32 %v850_v8, 0.0  ;;  %v853_v18 = vadd.f32 %v2267_v14, %v2541_v1  ;;  %v844_v20 = vpop.f32.mrb[27].mxu1  ;;  %v1024_v21 = vmax.f32 %v586_v11, 0.0  ;;  %v589_v23 = vadd.f32 %v2541_v1, %v588_v19 }
 0x145   :  { %v1088_v22 = vmax.f32 %v842_v12, 0.0  ;;  %v845_v24 = vadd.f32 %v2541_v1, %v844_v20  ;;  %v2007_v25 = vpack.c.bf16 %v1026_v15, %v1026_v15  ;;  %v1027_v27 = vmax.f32 %v597_v17, 0.0 }
 0x146   :  { %v2071_v26 = vpack.c.bf16 %v1090_v16, %v1090_v16  ;;  %v1091_v28 = vmax.f32 %v853_v18, 0.0  ;;  %v2005_v29 = vpack.c.bf16 %v1024_v21, %v1024_v21  ;;  %v1025_v31 = vmax.f32 %v589_v23, 0.0 }
 0x147   :  { %v2069_v30 = vpack.c.bf16 %v1088_v22, %v1088_v22  ;;  %v1089_v32 = vmax.f32 %v845_v24, 0.0  ;;  %1667 = vst.msk [vmem:[#allocation8 + $0x68] sm:$0xf] %vm1640_vm1, %v2007_v25  ;;  %v2008_v33 = vpack.c.bf16 %v1027_v27, %v1027_v27 }
 0x148   :  { %1731 = vst.msk [vmem:[#allocation8 + $0x168] sm:$0xf] %vm1640_vm1, %v2071_v26  ;;  %v2072_v34 = vpack.c.bf16 %v1091_v28, %v1091_v28  ;;  %1665 = vst.msk [vmem:[#allocation8 + $0x60] sm:$0xf] %vm1640_vm1, %v2005_v29  ;;  %v2006_v35 = vpack.c.bf16 %v1025_v31, %v1025_v31  ;;  %v2206_v37 = vpop.f32.mrb[28].mxu0 }
 0x149   :  { %1729 = vst.msk [vmem:[#allocation8 + $0x160] sm:$0xf] %vm1640_vm1, %v2069_v30  ;;  %v2070_v36 = vpack.c.bf16 %v1089_v32, %v1089_v32  ;;  %v2270_v38 = vpop.f32.mrb[28].mxu1  ;;  %1668 = vst.msk [vmem:[#allocation8 + $0x6c] sm:$0xf] %vm1640_vm1, %v2008_v33  ;;  %v610_v39 = vadd.f32 %v2206_v37, %v2541_v1  ;;  %v601_v41 = vpop.f32.mrb[29].mxu0 }
 0x14a   :  { %1732 = vst.msk [vmem:[#allocation8 + $0x16c] sm:$0xf] %vm1640_vm1, %v2072_v34  ;;  %v866_v40 = vadd.f32 %v2270_v38, %v2541_v1  ;;  %v857_v42 = vpop.f32.mrb[29].mxu1  ;;  %1666 = vst.msk [vmem:[#allocation8 + $0x64] sm:$0xf] %vm1640_vm1, %v2006_v35  ;;  %v602_v43 = vadd.f32 %v2541_v1, %v601_v41  ;;  %v2207_v45 = vpop.f32.mrb[30].mxu0 }
 0x14b   :  { %1730 = vst.msk [vmem:[#allocation8 + $0x164] sm:$0xf] %vm1640_vm1, %v2070_v36  ;;  %v858_v44 = vadd.f32 %v2541_v1, %v857_v42  ;;  %v2271_v46 = vpop.f32.mrb[30].mxu1  ;;  %v1030_v47 = vmax.f32 %v610_v39, 0.0  ;;  %v613_v49 = vadd.f32 %v2207_v45, %v2541_v1  ;;  %v604_v51 = vpop.f32.mrb[31].mxu0 }
 0x14c   :  { %v1094_v48 = vmax.f32 %v866_v40, 0.0  ;;  %v869_v50 = vadd.f32 %v2271_v46, %v2541_v1  ;;  %v860_v52 = vpop.f32.mrb[31].mxu1  ;;  %v1028_v53 = vmax.f32 %v602_v43, 0.0  ;;  %v605_v55 = vadd.f32 %v2541_v1, %v604_v51 }
 0x14d   :  { %v1092_v54 = vmax.f32 %v858_v44, 0.0  ;;  %v861_v56 = vadd.f32 %v2541_v1, %v860_v52  ;;  %v2011_v57 = vpack.c.bf16 %v1030_v47, %v1030_v47  ;;  %v1031_v59 = vmax.f32 %v613_v49, 0.0 }
 0x14e   :  { %v2075_v58 = vpack.c.bf16 %v1094_v48, %v1094_v48  ;;  %v1095_v60 = vmax.f32 %v869_v50, 0.0  ;;  %v2009_v61 = vpack.c.bf16 %v1028_v53, %v1028_v53  ;;  %v1029_v63 = vmax.f32 %v605_v55, 0.0 }
 0x14f   :  { %v2073_v62 = vpack.c.bf16 %v1092_v54, %v1092_v54  ;;  %v1093_v0 = vmax.f32 %v861_v56, 0.0  ;;  %1671 = vst.msk [vmem:[#allocation8 + $0x78] sm:$0xf] %vm1640_vm1, %v2011_v57  ;;  %v2012_v2 = vpack.c.bf16 %v1031_v59, %v1031_v59 }
 0x150   :  { %1735 = vst.msk [vmem:[#allocation8 + $0x178] sm:$0xf] %vm1640_vm1, %v2075_v58  ;;  %v2076_v3 = vpack.c.bf16 %v1095_v60, %v1095_v60  ;;  %1669 = vst.msk [vmem:[#allocation8 + $0x70] sm:$0xf] %vm1640_vm1, %v2009_v61  ;;  %v2010_v4 = vpack.c.bf16 %v1029_v63, %v1029_v63  ;;  %v2210_v6 = vpop.f32.mrb[32].mxu0 }
 0x151   :  { %1733 = vst.msk [vmem:[#allocation8 + $0x170] sm:$0xf] %vm1640_vm1, %v2073_v62  ;;  %v2074_v5 = vpack.c.bf16 %v1093_v0, %v1093_v0  ;;  %v2274_v7 = vpop.f32.mrb[32].mxu1  ;;  %1672 = vst.msk [vmem:[#allocation8 + $0x7c] sm:$0xf] %vm1640_vm1, %v2012_v2  ;;  %v626_v8 = vadd.f32 %v2210_v6, %v2541_v1  ;;  %v617_v10 = vpop.f32.mrb[33].mxu0 }
 0x152   :  { %1736 = vst.msk [vmem:[#allocation8 + $0x17c] sm:$0xf] %vm1640_vm1, %v2076_v3  ;;  %v882_v9 = vadd.f32 %v2274_v7, %v2541_v1  ;;  %v873_v11 = vpop.f32.mrb[33].mxu1  ;;  %1670 = vst.msk [vmem:[#allocation8 + $0x74] sm:$0xf] %vm1640_vm1, %v2010_v4  ;;  %v618_v12 = vadd.f32 %v2541_v1, %v617_v10  ;;  %v2211_v14 = vpop.f32.mrb[34].mxu0 }
 0x153   :  { %1734 = vst.msk [vmem:[#allocation8 + $0x174] sm:$0xf] %vm1640_vm1, %v2074_v5  ;;  %v874_v13 = vadd.f32 %v2541_v1, %v873_v11  ;;  %v2275_v15 = vpop.f32.mrb[34].mxu1  ;;  %v1034_v16 = vmax.f32 %v626_v8, 0.0  ;;  %v629_v18 = vadd.f32 %v2211_v14, %v2541_v1  ;;  %v620_v20 = vpop.f32.mrb[35].mxu0 }
 0x154   :  { %v1098_v17 = vmax.f32 %v882_v9, 0.0  ;;  %v885_v19 = vadd.f32 %v2275_v15, %v2541_v1  ;;  %v876_v21 = vpop.f32.mrb[35].mxu1  ;;  %v1032_v22 = vmax.f32 %v618_v12, 0.0  ;;  %v621_v24 = vadd.f32 %v2541_v1, %v620_v20 }
 0x155   :  { %v1096_v23 = vmax.f32 %v874_v13, 0.0  ;;  %v877_v25 = vadd.f32 %v2541_v1, %v876_v21  ;;  %v2015_v26 = vpack.c.bf16 %v1034_v16, %v1034_v16  ;;  %v1035_v28 = vmax.f32 %v629_v18, 0.0 }
 0x156   :  { %v2079_v27 = vpack.c.bf16 %v1098_v17, %v1098_v17  ;;  %v1099_v29 = vmax.f32 %v885_v19, 0.0  ;;  %v2013_v30 = vpack.c.bf16 %v1032_v22, %v1032_v22  ;;  %v1033_v32 = vmax.f32 %v621_v24, 0.0 }
 0x157   :  { %v2077_v31 = vpack.c.bf16 %v1096_v23, %v1096_v23  ;;  %v1097_v33 = vmax.f32 %v877_v25, 0.0  ;;  %1675 = vst.msk [vmem:[#allocation8 + $0x88] sm:$0xf] %vm1640_vm1, %v2015_v26  ;;  %v2016_v34 = vpack.c.bf16 %v1035_v28, %v1035_v28 }
 0x158   :  { %1739 = vst.msk [vmem:[#allocation8 + $0x188] sm:$0xf] %vm1640_vm1, %v2079_v27  ;;  %v2080_v35 = vpack.c.bf16 %v1099_v29, %v1099_v29  ;;  %1673 = vst.msk [vmem:[#allocation8 + $0x80] sm:$0xf] %vm1640_vm1, %v2013_v30  ;;  %v2014_v36 = vpack.c.bf16 %v1033_v32, %v1033_v32  ;;  %v2214_v38 = vpop.f32.mrb[36].mxu0 }
 0x159   :  { %1737 = vst.msk [vmem:[#allocation8 + $0x180] sm:$0xf] %vm1640_vm1, %v2077_v31  ;;  %v2078_v37 = vpack.c.bf16 %v1097_v33, %v1097_v33  ;;  %v2278_v39 = vpop.f32.mrb[36].mxu1  ;;  %1676 = vst.msk [vmem:[#allocation8 + $0x8c] sm:$0xf] %vm1640_vm1, %v2016_v34  ;;  %v642_v40 = vadd.f32 %v2214_v38, %v2541_v1  ;;  %v633_v42 = vpop.f32.mrb[37].mxu0 }
 0x15a   :  { %1740 = vst.msk [vmem:[#allocation8 + $0x18c] sm:$0xf] %vm1640_vm1, %v2080_v35  ;;  %v898_v41 = vadd.f32 %v2278_v39, %v2541_v1  ;;  %v889_v43 = vpop.f32.mrb[37].mxu1  ;;  %1674 = vst.msk [vmem:[#allocation8 + $0x84] sm:$0xf] %vm1640_vm1, %v2014_v36  ;;  %v634_v44 = vadd.f32 %v2541_v1, %v633_v42  ;;  %v2215_v46 = vpop.f32.mrb[38].mxu0 }
 0x15b   :  { %1738 = vst.msk [vmem:[#allocation8 + $0x184] sm:$0xf] %vm1640_vm1, %v2078_v37  ;;  %v890_v45 = vadd.f32 %v2541_v1, %v889_v43  ;;  %v2279_v47 = vpop.f32.mrb[38].mxu1  ;;  %v1038_v48 = vmax.f32 %v642_v40, 0.0  ;;  %v645_v50 = vadd.f32 %v2215_v46, %v2541_v1  ;;  %v636_v52 = vpop.f32.mrb[39].mxu0 }
 0x15c   :  { %v1102_v49 = vmax.f32 %v898_v41, 0.0  ;;  %v901_v51 = vadd.f32 %v2279_v47, %v2541_v1  ;;  %v892_v53 = vpop.f32.mrb[39].mxu1  ;;  %v1036_v54 = vmax.f32 %v634_v44, 0.0  ;;  %v637_v56 = vadd.f32 %v2541_v1, %v636_v52 }
 0x15d   :  { %v1100_v55 = vmax.f32 %v890_v45, 0.0  ;;  %v893_v57 = vadd.f32 %v2541_v1, %v892_v53  ;;  %v2019_v58 = vpack.c.bf16 %v1038_v48, %v1038_v48  ;;  %v1039_v60 = vmax.f32 %v645_v50, 0.0 }
 0x15e   :  { %v2083_v59 = vpack.c.bf16 %v1102_v49, %v1102_v49  ;;  %v1103_v61 = vmax.f32 %v901_v51, 0.0  ;;  %v2017_v62 = vpack.c.bf16 %v1036_v54, %v1036_v54  ;;  %v1037_v0 = vmax.f32 %v637_v56, 0.0 }
 0x15f   :  { %v2081_v63 = vpack.c.bf16 %v1100_v55, %v1100_v55  ;;  %v1101_v2 = vmax.f32 %v893_v57, 0.0  ;;  %1679 = vst.msk [vmem:[#allocation8 + $0x98] sm:$0xf] %vm1640_vm1, %v2019_v58  ;;  %v2020_v3 = vpack.c.bf16 %v1039_v60, %v1039_v60 }
 0x160   :  { %1743 = vst.msk [vmem:[#allocation8 + $0x198] sm:$0xf] %vm1640_vm1, %v2083_v59  ;;  %v2084_v4 = vpack.c.bf16 %v1103_v61, %v1103_v61  ;;  %1677 = vst.msk [vmem:[#allocation8 + $0x90] sm:$0xf] %vm1640_vm1, %v2017_v62  ;;  %v2018_v5 = vpack.c.bf16 %v1037_v0, %v1037_v0  ;;  %v2218_v7 = vpop.f32.mrb[40].mxu0 }
 0x161   :  { %1741 = vst.msk [vmem:[#allocation8 + $0x190] sm:$0xf] %vm1640_vm1, %v2081_v63  ;;  %v2082_v6 = vpack.c.bf16 %v1101_v2, %v1101_v2  ;;  %v2282_v8 = vpop.f32.mrb[40].mxu1  ;;  %1680 = vst.msk [vmem:[#allocation8 + $0x9c] sm:$0xf] %vm1640_vm1, %v2020_v3  ;;  %v658_v9 = vadd.f32 %v2218_v7, %v2541_v1  ;;  %v649_v11 = vpop.f32.mrb[41].mxu0 }
 0x162   :  { %1744 = vst.msk [vmem:[#allocation8 + $0x19c] sm:$0xf] %vm1640_vm1, %v2084_v4  ;;  %v914_v10 = vadd.f32 %v2282_v8, %v2541_v1  ;;  %v905_v12 = vpop.f32.mrb[41].mxu1  ;;  %1678 = vst.msk [vmem:[#allocation8 + $0x94] sm:$0xf] %vm1640_vm1, %v2018_v5  ;;  %v650_v13 = vadd.f32 %v2541_v1, %v649_v11  ;;  %v2219_v15 = vpop.f32.mrb[42].mxu0 }
 0x163   :  { %1742 = vst.msk [vmem:[#allocation8 + $0x194] sm:$0xf] %vm1640_vm1, %v2082_v6  ;;  %v906_v14 = vadd.f32 %v2541_v1, %v905_v12  ;;  %v2283_v16 = vpop.f32.mrb[42].mxu1  ;;  %v1042_v17 = vmax.f32 %v658_v9, 0.0  ;;  %v661_v19 = vadd.f32 %v2219_v15, %v2541_v1  ;;  %v652_v21 = vpop.f32.mrb[43].mxu0 }
 0x164   :  { %v1106_v18 = vmax.f32 %v914_v10, 0.0  ;;  %v917_v20 = vadd.f32 %v2283_v16, %v2541_v1  ;;  %v908_v22 = vpop.f32.mrb[43].mxu1  ;;  %v1040_v23 = vmax.f32 %v650_v13, 0.0  ;;  %v653_v25 = vadd.f32 %v2541_v1, %v652_v21 }
 0x165   :  { %v1104_v24 = vmax.f32 %v906_v14, 0.0  ;;  %v909_v26 = vadd.f32 %v2541_v1, %v908_v22  ;;  %v2023_v27 = vpack.c.bf16 %v1042_v17, %v1042_v17  ;;  %v1043_v29 = vmax.f32 %v661_v19, 0.0 }
 0x166   :  { %v2087_v28 = vpack.c.bf16 %v1106_v18, %v1106_v18  ;;  %v1107_v30 = vmax.f32 %v917_v20, 0.0  ;;  %v2021_v31 = vpack.c.bf16 %v1040_v23, %v1040_v23  ;;  %v1041_v33 = vmax.f32 %v653_v25, 0.0 }
 0x167   :  { %v2085_v32 = vpack.c.bf16 %v1104_v24, %v1104_v24  ;;  %v1105_v34 = vmax.f32 %v909_v26, 0.0  ;;  %1683 = vst.msk [vmem:[#allocation8 + $0xa8] sm:$0xf] %vm1640_vm1, %v2023_v27  ;;  %v2024_v35 = vpack.c.bf16 %v1043_v29, %v1043_v29 }
 0x168   :  { %1747 = vst.msk [vmem:[#allocation8 + $0x1a8] sm:$0xf] %vm1640_vm1, %v2087_v28  ;;  %v2088_v36 = vpack.c.bf16 %v1107_v30, %v1107_v30  ;;  %1681 = vst.msk [vmem:[#allocation8 + $0xa0] sm:$0xf] %vm1640_vm1, %v2021_v31  ;;  %v2022_v37 = vpack.c.bf16 %v1041_v33, %v1041_v33  ;;  %v2222_v39 = vpop.f32.mrb[44].mxu0 }
 0x169   :  { %1745 = vst.msk [vmem:[#allocation8 + $0x1a0] sm:$0xf] %vm1640_vm1, %v2085_v32  ;;  %v2086_v38 = vpack.c.bf16 %v1105_v34, %v1105_v34  ;;  %v2286_v40 = vpop.f32.mrb[44].mxu1  ;;  %1684 = vst.msk [vmem:[#allocation8 + $0xac] sm:$0xf] %vm1640_vm1, %v2024_v35  ;;  %v674_v41 = vadd.f32 %v2222_v39, %v2541_v1  ;;  %v665_v43 = vpop.f32.mrb[45].mxu0 }
 0x16a   :  { %1748 = vst.msk [vmem:[#allocation8 + $0x1ac] sm:$0xf] %vm1640_vm1, %v2088_v36  ;;  %v930_v42 = vadd.f32 %v2286_v40, %v2541_v1  ;;  %v921_v44 = vpop.f32.mrb[45].mxu1  ;;  %1682 = vst.msk [vmem:[#allocation8 + $0xa4] sm:$0xf] %vm1640_vm1, %v2022_v37  ;;  %v666_v45 = vadd.f32 %v2541_v1, %v665_v43  ;;  %v2223_v47 = vpop.f32.mrb[46].mxu0 }
 0x16b   :  { %1746 = vst.msk [vmem:[#allocation8 + $0x1a4] sm:$0xf] %vm1640_vm1, %v2086_v38  ;;  %v922_v46 = vadd.f32 %v2541_v1, %v921_v44  ;;  %v2287_v48 = vpop.f32.mrb[46].mxu1  ;;  %v1046_v49 = vmax.f32 %v674_v41, 0.0  ;;  %v677_v51 = vadd.f32 %v2223_v47, %v2541_v1  ;;  %v668_v53 = vpop.f32.mrb[47].mxu0 }
 0x16c   :  { %v1110_v50 = vmax.f32 %v930_v42, 0.0  ;;  %v933_v52 = vadd.f32 %v2287_v48, %v2541_v1  ;;  %v924_v54 = vpop.f32.mrb[47].mxu1  ;;  %v1044_v55 = vmax.f32 %v666_v45, 0.0  ;;  %v669_v57 = vadd.f32 %v2541_v1, %v668_v53  ;;  %v2749_v41 = vld [vmem:[#allocation7] ss:$0 sm:$0xff] }
 0x16d   :  { %v1108_v56 = vmax.f32 %v922_v46, 0.0  ;;  %v925_v58 = vadd.f32 %v2541_v1, %v924_v54  ;;  %v2027_v59 = vpack.c.bf16 %v1046_v49, %v1046_v49  ;;  %v1047_v61 = vmax.f32 %v677_v51, 0.0 }
 0x16e   :  { %v2091_v60 = vpack.c.bf16 %v1110_v50, %v1110_v50  ;;  %v1111_v62 = vmax.f32 %v933_v52, 0.0  ;;  %v2025_v63 = vpack.c.bf16 %v1044_v55, %v1044_v55  ;;  %v1045_v2 = vmax.f32 %v669_v57, 0.0 }
 0x16f   :  { %v2089_v0 = vpack.c.bf16 %v1108_v56, %v1108_v56  ;;  %v1109_v3 = vmax.f32 %v925_v58, 0.0  ;;  %1687 = vst.msk [vmem:[#allocation8 + $0xb8] sm:$0xf] %vm1640_vm1, %v2027_v59  ;;  %v2028_v4 = vpack.c.bf16 %v1047_v61, %v1047_v61 }
 0x170   :  { %1751 = vst.msk [vmem:[#allocation8 + $0x1b8] sm:$0xf] %vm1640_vm1, %v2091_v60  ;;  %v2092_v5 = vpack.c.bf16 %v1111_v62, %v1111_v62  ;;  %1685 = vst.msk [vmem:[#allocation8 + $0xb0] sm:$0xf] %vm1640_vm1, %v2025_v63  ;;  %v2026_v6 = vpack.c.bf16 %v1045_v2, %v1045_v2  ;;  %v2226_v8 = vpop.f32.mrb[48].mxu0 }
 0x171   :  { %1749 = vst.msk [vmem:[#allocation8 + $0x1b0] sm:$0xf] %vm1640_vm1, %v2089_v0  ;;  %v2090_v7 = vpack.c.bf16 %v1109_v3, %v1109_v3  ;;  %v2290_v9 = vpop.f32.mrb[48].mxu1  ;;  %1688 = vst.msk [vmem:[#allocation8 + $0xbc] sm:$0xf] %vm1640_vm1, %v2028_v4  ;;  %v690_v10 = vadd.f32 %v2226_v8, %v2541_v1  ;;  %v681_v12 = vpop.f32.mrb[49].mxu0 }
 0x172   :  { %1752 = vst.msk [vmem:[#allocation8 + $0x1bc] sm:$0xf] %vm1640_vm1, %v2092_v5  ;;  %v946_v11 = vadd.f32 %v2290_v9, %v2541_v1  ;;  %v937_v13 = vpop.f32.mrb[49].mxu1  ;;  %1686 = vst.msk [vmem:[#allocation8 + $0xb4] sm:$0xf] %vm1640_vm1, %v2026_v6  ;;  %v682_v14 = vadd.f32 %v2541_v1, %v681_v12  ;;  %v2227_v16 = vpop.f32.mrb[50].mxu0 }
 0x173   :  { %1750 = vst.msk [vmem:[#allocation8 + $0x1b4] sm:$0xf] %vm1640_vm1, %v2090_v7  ;;  %v938_v15 = vadd.f32 %v2541_v1, %v937_v13  ;;  %v2291_v17 = vpop.f32.mrb[50].mxu1  ;;  %v1050_v18 = vmax.f32 %v690_v10, 0.0  ;;  %v693_v20 = vadd.f32 %v2227_v16, %v2541_v1  ;;  %v684_v22 = vpop.f32.mrb[51].mxu0 }
 0x174   :  { %v1114_v19 = vmax.f32 %v946_v11, 0.0  ;;  %v949_v21 = vadd.f32 %v2291_v17, %v2541_v1  ;;  %v940_v23 = vpop.f32.mrb[51].mxu1  ;;  %v1048_v24 = vmax.f32 %v682_v14, 0.0  ;;  %v685_v26 = vadd.f32 %v2541_v1, %v684_v22 }
 0x175   :  { %v1112_v25 = vmax.f32 %v938_v15, 0.0  ;;  %v941_v27 = vadd.f32 %v2541_v1, %v940_v23  ;;  %v2031_v28 = vpack.c.bf16 %v1050_v18, %v1050_v18  ;;  %v1051_v30 = vmax.f32 %v693_v20, 0.0 }
 0x176   :  { %v2095_v29 = vpack.c.bf16 %v1114_v19, %v1114_v19  ;;  %v1115_v31 = vmax.f32 %v949_v21, 0.0  ;;  %v2029_v32 = vpack.c.bf16 %v1048_v24, %v1048_v24  ;;  %v1049_v34 = vmax.f32 %v685_v26, 0.0 }
 0x177   :  { %v2093_v33 = vpack.c.bf16 %v1112_v25, %v1112_v25  ;;  %v1113_v35 = vmax.f32 %v941_v27, 0.0  ;;  %1691 = vst.msk [vmem:[#allocation8 + $0xc8] sm:$0xf] %vm1640_vm1, %v2031_v28  ;;  %v2032_v36 = vpack.c.bf16 %v1051_v30, %v1051_v30 }
 0x178   :  { %1755 = vst.msk [vmem:[#allocation8 + $0x1c8] sm:$0xf] %vm1640_vm1, %v2095_v29  ;;  %v2096_v37 = vpack.c.bf16 %v1115_v31, %v1115_v31  ;;  %1689 = vst.msk [vmem:[#allocation8 + $0xc0] sm:$0xf] %vm1640_vm1, %v2029_v32  ;;  %v2030_v38 = vpack.c.bf16 %v1049_v34, %v1049_v34  ;;  %v2230_v39 = vpop.f32.mrb[52].mxu0 }
 0x179   :  { %1753 = vst.msk [vmem:[#allocation8 + $0x1c0] sm:$0xf] %vm1640_vm1, %v2093_v33  ;;  %v2094_v1 = vpack.c.bf16 %v1113_v35, %v1113_v35  ;;  %v2294_v40 = vpop.f32.mrb[52].mxu1  ;;  %1692 = vst.msk [vmem:[#allocation8 + $0xcc] sm:$0xf] %vm1640_vm1, %v2032_v36  ;;  %v706_v42 = vadd.f32 %v2749_v41, %v2230_v39  ;;  %v697_v44 = vpop.f32.mrb[53].mxu0 }
 0x17a   :  { %1756 = vst.msk [vmem:[#allocation8 + $0x1cc] sm:$0xf] %vm1640_vm1, %v2096_v37  ;;  %v962_v43 = vadd.f32 %v2749_v41, %v2294_v40  ;;  %v953_v45 = vpop.f32.mrb[53].mxu1  ;;  %1690 = vst.msk [vmem:[#allocation8 + $0xc4] sm:$0xf] %vm1640_vm1, %v2030_v38  ;;  %v698_v46 = vadd.f32 %v2749_v41, %v697_v44  ;;  %v2231_v48 = vpop.f32.mrb[54].mxu0 }
 0x17b   :  { %1754 = vst.msk [vmem:[#allocation8 + $0x1c4] sm:$0xf] %vm1640_vm1, %v2094_v1  ;;  %v954_v47 = vadd.f32 %v2749_v41, %v953_v45  ;;  %v2295_v49 = vpop.f32.mrb[54].mxu1  ;;  %v1054_v50 = vmax.f32 %v706_v42, 0.0  ;;  %v709_v52 = vadd.f32 %v2749_v41, %v2231_v48  ;;  %v700_v54 = vpop.f32.mrb[55].mxu0 }
 0x17c   :  { %v1118_v51 = vmax.f32 %v962_v43, 0.0  ;;  %v965_v53 = vadd.f32 %v2749_v41, %v2295_v49  ;;  %v956_v55 = vpop.f32.mrb[55].mxu1  ;;  %v1052_v56 = vmax.f32 %v698_v46, 0.0  ;;  %v701_v58 = vadd.f32 %v2749_v41, %v700_v54 }
 0x17d   :  { %v1116_v57 = vmax.f32 %v954_v47, 0.0  ;;  %v957_v59 = vadd.f32 %v2749_v41, %v956_v55  ;;  %v2035_v60 = vpack.c.bf16 %v1054_v50, %v1054_v50  ;;  %v1055_v62 = vmax.f32 %v709_v52, 0.0 }
 0x17e   :  { %v2099_v61 = vpack.c.bf16 %v1118_v51, %v1118_v51  ;;  %v1119_v63 = vmax.f32 %v965_v53, 0.0  ;;  %v2033_v0 = vpack.c.bf16 %v1052_v56, %v1052_v56  ;;  %v1053_v3 = vmax.f32 %v701_v58, 0.0 }
 0x17f   :  { %v2097_v2 = vpack.c.bf16 %v1116_v57, %v1116_v57  ;;  %v1117_v4 = vmax.f32 %v957_v59, 0.0  ;;  %1695 = vst.msk [vmem:[#allocation8 + $0xd8] sm:$0xf] %vm1640_vm1, %v2035_v60  ;;  %v2036_v5 = vpack.c.bf16 %v1055_v62, %v1055_v62 }
 0x180   :  { %1759 = vst.msk [vmem:[#allocation8 + $0x1d8] sm:$0xf] %vm1640_vm1, %v2099_v61  ;;  %v2100_v6 = vpack.c.bf16 %v1119_v63, %v1119_v63  ;;  %1693 = vst.msk [vmem:[#allocation8 + $0xd0] sm:$0xf] %vm1640_vm1, %v2033_v0  ;;  %v2034_v7 = vpack.c.bf16 %v1053_v3, %v1053_v3  ;;  %v2234_v9 = vpop.f32.mrb[56].mxu0 }
 0x181   :  { %1757 = vst.msk [vmem:[#allocation8 + $0x1d0] sm:$0xf] %vm1640_vm1, %v2097_v2  ;;  %v2098_v8 = vpack.c.bf16 %v1117_v4, %v1117_v4  ;;  %v2298_v10 = vpop.f32.mrb[56].mxu1  ;;  %1696 = vst.msk [vmem:[#allocation8 + $0xdc] sm:$0xf] %vm1640_vm1, %v2036_v5  ;;  %v722_v11 = vadd.f32 %v2749_v41, %v2234_v9  ;;  %v713_v13 = vpop.f32.mrb[57].mxu0 }
 0x182   :  { %1760 = vst.msk [vmem:[#allocation8 + $0x1dc] sm:$0xf] %vm1640_vm1, %v2100_v6  ;;  %v978_v12 = vadd.f32 %v2749_v41, %v2298_v10  ;;  %v969_v14 = vpop.f32.mrb[57].mxu1  ;;  %1694 = vst.msk [vmem:[#allocation8 + $0xd4] sm:$0xf] %vm1640_vm1, %v2034_v7  ;;  %v714_v15 = vadd.f32 %v2749_v41, %v713_v13  ;;  %v2235_v17 = vpop.f32.mrb[58].mxu0 }
 0x183   :  { %1758 = vst.msk [vmem:[#allocation8 + $0x1d4] sm:$0xf] %vm1640_vm1, %v2098_v8  ;;  %v970_v16 = vadd.f32 %v2749_v41, %v969_v14  ;;  %v2299_v18 = vpop.f32.mrb[58].mxu1  ;;  %v1058_v19 = vmax.f32 %v722_v11, 0.0  ;;  %v725_v21 = vadd.f32 %v2749_v41, %v2235_v17  ;;  %v716_v23 = vpop.f32.mrb[59].mxu0 }
 0x184   :  { %v1122_v20 = vmax.f32 %v978_v12, 0.0  ;;  %v981_v22 = vadd.f32 %v2749_v41, %v2299_v18  ;;  %v972_v24 = vpop.f32.mrb[59].mxu1  ;;  %v1056_v25 = vmax.f32 %v714_v15, 0.0  ;;  %v717_v27 = vadd.f32 %v2749_v41, %v716_v23 }
 0x185   :  { %v1120_v26 = vmax.f32 %v970_v16, 0.0  ;;  %v973_v28 = vadd.f32 %v2749_v41, %v972_v24  ;;  %v2039_v29 = vpack.c.bf16 %v1058_v19, %v1058_v19  ;;  %v1059_v31 = vmax.f32 %v725_v21, 0.0 }
 0x186   :  { %v2103_v30 = vpack.c.bf16 %v1122_v20, %v1122_v20  ;;  %v1123_v32 = vmax.f32 %v981_v22, 0.0  ;;  %v2037_v33 = vpack.c.bf16 %v1056_v25, %v1056_v25  ;;  %v1057_v35 = vmax.f32 %v717_v27, 0.0 }
 0x187   :  { %v2101_v34 = vpack.c.bf16 %v1120_v26, %v1120_v26  ;;  %v1121_v36 = vmax.f32 %v973_v28, 0.0  ;;  %1699 = vst.msk [vmem:[#allocation8 + $0xe8] sm:$0xf] %vm1640_vm1, %v2039_v29  ;;  %v2040_v37 = vpack.c.bf16 %v1059_v31, %v1059_v31 }
 0x188   :  { %1763 = vst.msk [vmem:[#allocation8 + $0x1e8] sm:$0xf] %vm1640_vm1, %v2103_v30  ;;  %v2104_v38 = vpack.c.bf16 %v1123_v32, %v1123_v32  ;;  %1697 = vst.msk [vmem:[#allocation8 + $0xe0] sm:$0xf] %vm1640_vm1, %v2037_v33  ;;  %v2038_v1 = vpack.c.bf16 %v1057_v35, %v1057_v35  ;;  %v2238_v40 = vpop.f32.mrb[60].mxu0 }
 0x189   :  { %1761 = vst.msk [vmem:[#allocation8 + $0x1e0] sm:$0xf] %vm1640_vm1, %v2101_v34  ;;  %v2102_v39 = vpack.c.bf16 %v1121_v36, %v1121_v36  ;;  %v2302_v42 = vpop.f32.mrb[60].mxu1  ;;  %1700 = vst.msk [vmem:[#allocation8 + $0xec] sm:$0xf] %vm1640_vm1, %v2040_v37  ;;  %v738_v43 = vadd.f32 %v2749_v41, %v2238_v40  ;;  %v729_v45 = vpop.f32.mrb[61].mxu0 }
 0x18a   :  { %1764 = vst.msk [vmem:[#allocation8 + $0x1ec] sm:$0xf] %vm1640_vm1, %v2104_v38  ;;  %v994_v44 = vadd.f32 %v2749_v41, %v2302_v42  ;;  %v985_v46 = vpop.f32.mrb[61].mxu1  ;;  %1698 = vst.msk [vmem:[#allocation8 + $0xe4] sm:$0xf] %vm1640_vm1, %v2038_v1  ;;  %v730_v47 = vadd.f32 %v2749_v41, %v729_v45  ;;  %v2239_v49 = vpop.f32.mrb[62].mxu0 }
 0x18b   :  { %1762 = vst.msk [vmem:[#allocation8 + $0x1e4] sm:$0xf] %vm1640_vm1, %v2102_v39  ;;  %v986_v48 = vadd.f32 %v2749_v41, %v985_v46  ;;  %v2303_v50 = vpop.f32.mrb[62].mxu1  ;;  %v1062_v51 = vmax.f32 %v738_v43, 0.0  ;;  %v741_v53 = vadd.f32 %v2749_v41, %v2239_v49  ;;  %v732_v55 = vpop.f32.mrb[63].mxu0 }
 0x18c   :  { %v1126_v52 = vmax.f32 %v994_v44, 0.0  ;;  %v997_v54 = vadd.f32 %v2749_v41, %v2303_v50  ;;  %v988_v56 = vpop.f32.mrb[63].mxu1  ;;  %v1060_v57 = vmax.f32 %v730_v47, 0.0  ;;  %v733_v59 = vadd.f32 %v2749_v41, %v732_v55 }
 0x18d   :  { %v1124_v58 = vmax.f32 %v986_v48, 0.0  ;;  %v989_v60 = vadd.f32 %v2749_v41, %v988_v56  ;;  %v2043_v61 = vpack.c.bf16 %v1062_v51, %v1062_v51  ;;  %v1063_v63 = vmax.f32 %v741_v53, 0.0 }
 0x18e   :  { %v2107_v62 = vpack.c.bf16 %v1126_v52, %v1126_v52  ;;  %v1127_v0 = vmax.f32 %v997_v54, 0.0  ;;  %v2041_v2 = vpack.c.bf16 %v1060_v57, %v1060_v57  ;;  %v1061_v4 = vmax.f32 %v733_v59, 0.0 }
 0x18f   :  { %v2105_v3 = vpack.c.bf16 %v1124_v58, %v1124_v58  ;;  %v1125_v5 = vmax.f32 %v989_v60, 0.0  ;;  %1703 = vst.msk [vmem:[#allocation8 + $0xf8] sm:$0xf] %vm1640_vm1, %v2043_v61  ;;  %v2044_v6 = vpack.c.bf16 %v1063_v63, %v1063_v63 }
 0x190   :  { %1767 = vst.msk [vmem:[#allocation8 + $0x1f8] sm:$0xf] %vm1640_vm1, %v2107_v62  ;;  %v2108_v7 = vpack.c.bf16 %v1127_v0, %v1127_v0  ;;  %1701 = vst.msk [vmem:[#allocation8 + $0xf0] sm:$0xf] %vm1640_vm1, %v2041_v2  ;;  %v2042_v41 = vpack.c.bf16 %v1061_v4, %v1061_v4 }
 0x191   :  { %1765 = vst.msk [vmem:[#allocation8 + $0x1f0] sm:$0xf] %vm1640_vm1, %v2105_v3  ;;  %v2106_v8 = vpack.c.bf16 %v1125_v5, %v1125_v5  ;;  %1704 = vst.msk [vmem:[#allocation8 + $0xfc] sm:$0xf] %vm1640_vm1, %v2044_v6 }
 0x192   :  { %1768 = vst.msk [vmem:[#allocation8 + $0x1fc] sm:$0xf] %vm1640_vm1, %v2108_v7  ;;  %1702 = vst.msk [vmem:[#allocation8 + $0xf4] sm:$0xf] %vm1640_vm1, %v2042_v41 }
 0x193   :  { %1766 = vst.msk [vmem:[#allocation8 + $0x1f4] sm:$0xf] %vm1640_vm1, %v2106_v8 }
 0x194   :  { %2393 = shalt.err (!%p2390_p0)
}
 0x195   :  { %s2394_s30 = scalar_lea.hbm %s2819_s3, 8192 }
 0x196   :  { %p2395_p1 = scmp.ne.s32.totalorder %s2819_s3, %s2394_s30  ;;  %p2398_p2 = scmp.lt.u32.totalorder %s2394_s30, %s2819_s3 }
 0x198   :  { %p2400_p3 = pnand %p2398_p2, %p2395_p1 }
 0x19a   :  { %2403 = shalt.err (!%p2400_p3)
}
 0x19b   :  { %1780 = dma.vmem_to_hbm [thread:$0]  %s1775_s26, 8192, %s2819_s3, [#allocation4], %s2411_s22, %s2411_s22, %s2412_s23  }
 0x19c   :  { %2408 = dma.done.wait [#allocation4], 8192  }
 0x19d   :  { %2409 = vsyncadd [#allocation4], 4294959104 }
 0x19e   :  { %1784 = vsyncpa [#allocation3], 1 }
 0x19f   :  { %1785 = vsyncpa [#allocation6], 1 }
 0x1a0   :  { %1786 = vsyncpa [#allocation4], 1 }

</bundles_post_ra>
